<compile_context>
chip_gen: v5e
topology: v5e:2x2
jax: 0.10.0
libtpu: 0.0.40
codegen_flags: <defaults>
</compile_context>

<pallas_src>
import math

import jax
import jax.numpy as jnp
from jax.experimental import pallas as pl
from jax.experimental.pallas import tpu as pltpu

EPS = 1e-5                       # torch.nn.InstanceNorm1d default eps
SQRT_2_OVER_PI = 0.7978845608028654
LANES = 128
MXU_DTYPE = jnp.bfloat16         # MXU-operand dtype (f32 accumulate everywhere)

# taps of the fused k=5 depthwise conv handled by roll: (tap index j, row shift s)
# out[t] += w[j] * x[t - s]   with s = 2 - j  (j = 2, the center tap, needs no roll)
_TAP_SHIFTS = ((0, 2), (1, 1), (3, -1), (4, -2))


# ----------------------------------------------------------------------------
# in-kernel helpers (traced values, f32 except MXU operands)
# ----------------------------------------------------------------------------
def _instance_norm(y):
    # y: (L, C_packed); per-column norm over the length axis (== InstanceNorm1d,
    # biased variance, eps=1e-5, no affine).  One-pass sum / sum-of-squares, f32.
    n = y.shape[0]
    s1 = jnp.sum(y, axis=0, keepdims=True)
    s2 = jnp.sum(y * y, axis=0, keepdims=True)
    mu = s1 * (1.0 / n)
    var = jnp.maximum(s2 * (1.0 / n) - mu * mu, 0.0)
    return (y - mu) * jax.lax.rsqrt(var + EPS)


def _gelu_tanh(x):
    # TODO(synk): nn.GELU() defaults to exact erf; tanh approximation (EUP slot)
    # differs by <= ~1e-3 elementwise.
    return 0.5 * x * (1.0 + jnp.tanh(SQRT_2_OVER_PI * (x + 0.044715 * x * x * x)))


def _mxu(a, b):
    # bf16 operands, f32 accumulate.
    return jnp.dot(a.astype(MXU_DTYPE), b.astype(MXU_DTYPE),
                   preferred_element_type=jnp.float32)


# ----------------------------------------------------------------------------
# weight / constant slab (one lane-aligned f32 array, 8-row-aligned segments)
# ----------------------------------------------------------------------------
class _SlabBuilder:
    def __init__(self):
        self._parts = []
        self._row = 0

    def add(self, a):
        a = jnp.asarray(a, jnp.float32)
        if a.ndim == 1:
            a = a[None, :]
        rows, cols = a.shape
        assert cols <= LANES, (rows, cols)
        pad_r = (-rows) % 8
        self._parts.append(jnp.pad(a, ((0, pad_r), (0, LANES - cols))))
        seg = (self._row, rows, cols)          # static offsets baked into the kernel
        self._row += rows + pad_r
        return seg

    def build(self):
        return jnp.concatenate(self._parts, axis=0)


# ----------------------------------------------------------------------------
# fused kernel: whole BLConv stack, single grid step, batch packed on lanes
# ----------------------------------------------------------------------------
def _build_kernel(plan):
    def kernel(x_ref, slab_ref, o_ref):
        def load(seg):
            off, rows, cols = seg
            return slab_ref[pl.ds(off, rows), pl.ds(0, cols)]

        h = None
        for layer in plan:
            kind = layer["kind"]
            if kind == "patch0":
                # input already arrives as [even taps | odd taps] on lanes:
                # one (L, 2*B*Cin) @ (2*B*Cin, B*Cout) matmul.
                y = _mxu(x_ref[...], load(layer["w"])) + load(layer["b"])
                h = _instance_norm(y)
            elif kind == "patch":
                # even/odd row gather via ONE precomputed 0/1 matmul (exact, f32),
                # stacked on sublanes; then two block-diagonal weight matmuls
                # (avoids a lane concat).
                lout = layer["lout"]
                xeo = jnp.dot(load(layer["sel"]), h,
                              preferred_element_type=jnp.float32)   # (2*lout, B*Cin)
                y = (_mxu(xeo[:lout], load(layer["w_top"]))
                     + _mxu(xeo[lout:], load(layer["w_bot"]))
                     + load(layer["b"]))
                h = _instance_norm(y)
            else:  # msconv
                L = layer["l"]
                taps = load(layer["taps"])     # (5, 2*B*d)
                mask = load(layer["mask"])     # (L, 4) precomputed roll edge masks
                x2 = jnp.concatenate([h, h], axis=-1)          # (L, 2*B*d)
                acc = x2 * taps[2:3, :]                        # center tap
                for mi, (j, s) in enumerate(_TAP_SHIFTS):
                    rolled = pltpu.roll(x2, shift=s % L, axis=0)   # XLU sublane rotation
                    acc = acc + rolled * (mask[:, mi:mi + 1] * taps[j:j + 1, :])
                acc = acc + load(layer["db"])
                y = _mxu(acc, load(layer["pw"])) + load(layer["pwb"])
                h = _gelu_tanh(_instance_norm(y))
                # TODO(synk): nn.Dropout(0.2) is an inference-time identity; not applied.
        o_ref[...] = h.astype(o_ref.dtype)

    return kernel


def blconv_forward(x_ncl, plan, slab, meta):
    # x_ncl: (B, C_in, L) exactly like the PyTorch module input.
    B, C0, L0 = x_ncl.shape
    assert B == meta["batch"]
    le0 = L0 // 2

    # Layout plumbing only (no arithmetic): pack batch along the lane axis and
    # pre-split the first PatchEmbed's stride-2 taps -> (L0/2, 2*B*C0).
    xe = jnp.transpose(x_ncl[:, :, 0::2], (2, 0, 1)).reshape(le0, B * C0)
    xo = jnp.transpose(x_ncl[:, :, 1::2], (2, 0, 1)).reshape(le0, B * C0)
    x_packed = jnp.concatenate([xe, xo], axis=1)

    out_len, out_dim = meta["out_len"], meta["out_dim"]
    bytes_acc = 4 * (x_packed.size + slab.size + out_len * B * out_dim)

    y_packed = pl.pallas_call(
        _build_kernel(plan),
        out_shape=jax.ShapeDtypeStruct((out_len, B * out_dim), x_ncl.dtype),
        grid=(1,),
        in_specs=[pl.BlockSpec(x_packed.shape, lambda i: (0, 0)),
                  pl.BlockSpec(slab.shape, lambda i: (0, 0))],
        out_specs=pl.BlockSpec((out_len, B * out_dim), lambda i: (0, 0)),
        compiler_params=pltpu.CompilerParams(dimension_semantics=("arbitrary",)),
        cost_estimate=pl.CostEstimate(flops=meta["flops"],
                                      transcendentals=meta["transcendentals"],
                                      bytes_accessed=int(bytes_acc)),
    )(x_packed, slab)

    # BLConv.forward ends with x.transpose(1, 2): un-pack batch from the lane axis.
    return jnp.transpose(y_packed.reshape(out_len, B, out_dim), (1, 0, 2))


# ----------------------------------------------------------------------------
# deterministic parameter init + host-side packing (batch-block-diagonal, slab)
# ----------------------------------------------------------------------------
def init_blconv_params(key, in_chan, depths, dims, seq_len, batch):
    """Returns (plan, slab, meta, torch_layout_params)."""
    all_dims = [in_chan] + list(dims)
    sb = _SlabBuilder()
    plan, torch_layers = [], []
    eye_b = jnp.eye(batch, dtype=jnp.float32)
    L = seq_len
    flops = 0
    transc = 0

    for i in range(len(depths)):
        cin, cout = all_dims[i], all_dims[i + 1]
        key, k1, k2 = jax.random.split(key, 3)
        # PatchEmbed: Conv1d(cin, cout, kernel=2, stride=2) weight (cout, cin, 2)
        w = jax.random.normal(k1, (cout, cin, 2), jnp.float32) / math.sqrt(2 * cin)
        b = jax.random.normal(k2, (cout,), jnp.float32) * 0.02
        torch_layers.append(("patch", dict(w=w, b=b)))

        # block-diagonal over the batch: lane layout is [batch0 chans | batch1 chans | ...]
        w_top = jnp.kron(eye_b, w[:, :, 0].T)            # (B*cin, B*cout)
        w_bot = jnp.kron(eye_b, w[:, :, 1].T)            # (B*cin, B*cout)
        b_big = jnp.tile(b[None, :], (1, batch))         # (1, B*cout)
        lout = L // 2
        if i == 0:
            plan.append(dict(kind="patch0", cout=cout, lout=lout,
                             w=sb.add(jnp.concatenate([w_top, w_bot], axis=0)),
                             b=sb.add(b_big)))
            flops += 2 * lout * (2 * batch * cin) * (batch * cout)
        else:
            sel_e = jnp.eye(L, dtype=jnp.float32)[0::2, :]     # (lout, L)
            sel_o = jnp.eye(L, dtype=jnp.float32)[1::2, :]
            plan.append(dict(kind="patch", cout=cout, lout=lout,
                             sel=sb.add(jnp.concatenate([sel_e, sel_o], axis=0)),
                             w_top=sb.add(w_top), w_bot=sb.add(w_bot),
                             b=sb.add(b_big)))
            flops += 2 * (2 * lout) * L * (batch * cin)
            flops += 2 * (2 * lout) * (batch * cin) * (batch * cout)
        transc += batch * cout
        L = lout

        d = cout
        for _ in range(depths[i]):
            key, *ks = jax.random.split(key, 9)
            # grouped depthwise convs: Conv1d(d, 2d, k, groups=d) -> (2d, 1, k)
            dw1_w = jax.random.normal(ks[0], (2 * d, 1, 1), jnp.float32) * 0.5
            dw1_b = jax.random.normal(ks[1], (2 * d,), jnp.float32) * 0.02
            dw3_w = jax.random.normal(ks[2], (2 * d, 1, 3), jnp.float32) / math.sqrt(3.0)
            dw3_b = jax.random.normal(ks[3], (2 * d,), jnp.float32) * 0.02
            dw5_w = jax.random.normal(ks[4], (2 * d, 1, 5), jnp.float32) / math.sqrt(5.0)
            dw5_b = jax.random.normal(ks[5], (2 * d,), jnp.float32) * 0.02
            # pointwise conv: Conv1d(2d, d, 1) -> (d, 2d)
            pw_w = jax.random.normal(ks[6], (d, 2 * d), jnp.float32) / math.sqrt(2.0 * d)
            pw_b = jax.random.normal(ks[7], (d,), jnp.float32) * 0.02
            torch_layers.append(("msconv", dict(dw1_w=dw1_w, dw1_b=dw1_b,
                                                dw3_w=dw3_w, dw3_b=dw3_b,
                                                dw5_w=dw5_w, dw5_b=dw5_b,
                                                pw_w=pw_w, pw_b=pw_b)))

            # dwconv1 + dwconv3 + dwconv5 ('same') == one k=5 depthwise conv
            # with taps summed exactly as MSConv.fuse() does.
            w_eff = dw5_w[:, 0, :]
            w_eff = w_eff.at[:, 2].add(dw1_w[:, 0, 0])
            w_eff = w_eff.at[:, 1:4].add(dw3_w[:, 0, :])
            b_eff = dw1_b + dw3_b + dw5_b

            # grouped-conv channel order: out channels (2c, 2c+1) come from in channel c.
            # Pack even ("A") / odd ("B") halves side by side on lanes, tiled per batch.
            taps_a, taps_b = w_eff[0::2, :].T, w_eff[1::2, :].T          # (5, d) each
            taps = jnp.concatenate([jnp.tile(taps_a, (1, batch)),
                                    jnp.tile(taps_b, (1, batch))], axis=1)   # (5, 2Bd)
            db = jnp.concatenate([jnp.tile(b_eff[0::2][None, :], (1, batch)),
                                  jnp.tile(b_eff[1::2][None, :], (1, batch))], axis=1)
            pw_a, pw_b_half = pw_w[:, 0::2].T, pw_w[:, 1::2].T           # (d, d) each
            pw_big = jnp.concatenate([jnp.kron(eye_b, pw_a),
                                      jnp.kron(eye_b, pw_b_half)], axis=0)   # (2Bd, Bd)
            pwb_big = jnp.tile(pw_b[None, :], (1, batch))                # (1, Bd)

            # precomputed roll edge masks (one 0/1 column per non-center tap)
            t = jnp.arange(L, dtype=jnp.float32)[:, None]
            mask = jnp.concatenate([t >= 2, t >= 1, t <= L - 2, t <= L - 3],
                                   axis=1).astype(jnp.float32)           # (L, 4)

            plan.append(dict(kind="msconv", d=d, l=L,
                             taps=sb.add(taps), db=sb.add(db), mask=sb.add(mask),
                             pw=sb.add(pw_big), pwb=sb.add(pwb_big)))
            flops += 14 * L * 2 * batch * d                        # depthwise + masks
            flops += 2 * L * (2 * batch * d) * (batch * d)         # pointwise
            transc += L * batch * d + batch * d                    # gelu + rsqrt

    slab = sb.build()
    meta = dict(batch=batch, out_len=L, out_dim=all_dims[-1],
                flops=int(flops), transcendentals=int(transc))
    return plan, slab, meta, torch_layers


# ----------------------------------------------------------------------------
# plain-JAX (XLA) reference of the PyTorch module, for correctness checking.
# The MXU matmuls (patch conv + pointwise conv) use the SAME bf16-operand /
# f32-accumulate contract as the kernel so the tolerance can be tight.
# ----------------------------------------------------------------------------
def _conv1d_ref(x, w, b, stride=1, padding="SAME", groups=1, mxu=False):
    if mxu:
        x = x.astype(MXU_DTYPE)
        w = w.astype(MXU_DTYPE)
        prec = None
    else:
        prec = jax.lax.Precision.HIGHEST
    y = jax.lax.conv_general_dilated(
        x, w, window_strides=(stride,), padding=padding,
        dimension_numbers=("NCH", "OIH", "NCH"),
        feature_group_count=groups,
        preferred_element_type=jnp.float32,
        precision=prec)
    return y + b[None, :, None]


def _instance_norm_ref(x):
    mu = jnp.mean(x, axis=-1, keepdims=True)
    var = jnp.mean((x - mu) ** 2, axis=-1, keepdims=True)
    return (x - mu) * jax.lax.rsqrt(var + EPS)


def blconv_reference(x, torch_layers):
    h = x
    for kind, p in torch_layers:
        if kind == "patch":
            h = _instance_norm_ref(_conv1d_ref(h, p["w"], p["b"], stride=2,
                                               padding="VALID", mxu=True))
        else:
            d = p["pw_w"].shape[0]
            h = (_conv1d_ref(h, p["dw1_w"], p["dw1_b"], groups=d)
                 + _conv1d_ref(h, p["dw3_w"], p["dw3_b"], groups=d)
                 + _conv1d_ref(h, p["dw5_w"], p["dw5_b"], groups=d))
            h = _conv1d_ref(h, p["pw_w"][:, :, None], p["pw_b"],
                            padding="VALID", mxu=True)
            h = _gelu_tanh(_instance_norm_ref(h))    # kernel uses tanh-GELU too
    return jnp.transpose(h, (0, 2, 1))


if __name__ == "__main__":
    key = jax.random.PRNGKey(0)
    k_in, k_par = jax.random.split(key)

    B, in_chan, L = 2, 4, 64
    depths, dims = [1, 1, 1], [8, 16, 32]

    x = jax.random.normal(k_in, (B, in_chan, L), jnp.float32)
    plan, slab, meta, torch_layers = init_blconv_params(
        k_par, in_chan, depths, dims, seq_len=L, batch=B)

    y = jax.block_until_ready(blconv_forward(x, plan, slab, meta))

    out_len = L // (2 ** len(depths))
    assert y.shape == (B, out_len, dims[-1]), y.shape
    assert bool(jnp.all(jnp.isfinite(y)))

    # numerical check against the plain-XLA reference (same bf16 MXU contract)
    y_ref = jax.block_until_ready(blconv_reference(x, torch_layers))
    max_err = float(jnp.max(jnp.abs(y - y_ref)))
    assert max_err < 2e-2, f"max abs err {max_err}"

    print("KERNEL_OK")
</pallas_src>

<mosaic_0001>
module attributes {stable_mosaic.version = 11 : i64} {
  func.func @kernel(%arg0: i32, %arg1: memref<32x16xf32, #tpu.memory_space<vmem>>, %arg2: memref<536x128xf32, #tpu.memory_space<vmem>>, %arg3: memref<8x64xf32, #tpu.memory_space<vmem>>) attributes {dimension_semantics = [#tpu.dimension_semantics<arbitrary>], iteration_bounds = array<i64: 1>, scalar_prefetch = 0 : i64, scratch_operands = 0 : i64, tpu.core_type = #tpu.core_type<tc>, window_params = [{pipeline_mode = #tpu.pipeline_mode<synchronous>, transform_indices = @transform_0, window_bounds = array<i64: 32, 16>}, {pipeline_mode = #tpu.pipeline_mode<synchronous>, transform_indices = @transform_1, window_bounds = array<i64: 536, 128>}, {pipeline_mode = #tpu.pipeline_mode<synchronous>, transform_indices = @transform_2, window_bounds = array<i64: 8, 64>}]} {
    %c0 = arith.constant 0 : index
    %c0_0 = arith.constant 0 : index
    %0 = vector.load %arg1[%c0, %c0_0] : memref<32x16xf32, #tpu.memory_space<vmem>>, vector<32x16xf32>
    %c0_1 = arith.constant 0 : index
    %c0_2 = arith.constant 0 : index
    %1 = vector.load %arg2[%c0_1, %c0_2] : memref<536x128xf32, #tpu.memory_space<vmem>>, vector<16x16xf32>
    %2 = arith.truncf %0 : vector<32x16xf32> to vector<32x16xbf16>
    %3 = arith.truncf %1 : vector<16x16xf32> to vector<16x16xbf16>
    %cst = arith.constant dense<0.000000e+00> : vector<32x16xf32>
    %4 = tpu.matmul %2, %3, %cst {dimension_numbers = #tpu.dot_dimension_numbers<[1], [0], [0], [1], [0, 0, 1, 1], [], []>} : vector<32x16xbf16>, vector<16x16xbf16>, vector<32x16xf32> -> vector<32x16xf32>
    %c16 = arith.constant 16 : index
    %c0_3 = arith.constant 0 : index
    %5 = vector.load %arg2[%c16, %c0_3] : memref<536x128xf32, #tpu.memory_space<vmem>>, vector<1x16xf32>
    %6 = vector.broadcast %5 : vector<1x16xf32> to vector<32x16xf32>
    %7 = arith.addf %4, %6 : vector<32x16xf32>
    %cst_4 = arith.constant dense<0.000000e+00> : vector<16xf32>
    %8 = vector.multi_reduction <add>, %7, %cst_4 [0] : vector<32x16xf32> to vector<16xf32>
    %9 = vector.shape_cast %8 : vector<16xf32> to vector<1x16xf32>
    %10 = arith.mulf %7, %7 : vector<32x16xf32>
    %cst_5 = arith.constant dense<0.000000e+00> : vector<16xf32>
    %11 = vector.multi_reduction <add>, %10, %cst_5 [0] : vector<32x16xf32> to vector<16xf32>
    %12 = vector.shape_cast %11 : vector<16xf32> to vector<1x16xf32>
    %cst_6 = arith.constant 3.125000e-02 : f32
    %13 = vector.broadcast %cst_6 : f32 to vector<1x16xf32>
    %14 = arith.mulf %9, %13 : vector<1x16xf32>
    %cst_7 = arith.constant 3.125000e-02 : f32
    %15 = vector.broadcast %cst_7 : f32 to vector<1x16xf32>
    %16 = arith.mulf %12, %15 : vector<1x16xf32>
    %17 = arith.mulf %14, %14 : vector<1x16xf32>
    %18 = arith.subf %16, %17 : vector<1x16xf32>
    %cst_8 = arith.constant 0.000000e+00 : f32
    %19 = vector.broadcast %cst_8 : f32 to vector<1x16xf32>
    %20 = arith.maximumf %18, %19 : vector<1x16xf32>
    %21 = vector.broadcast %14 : vector<1x16xf32> to vector<32x16xf32>
    %22 = arith.subf %7, %21 : vector<32x16xf32>
    %cst_9 = arith.constant 9.99999974E-6 : f32
    %23 = vector.broadcast %cst_9 : f32 to vector<1x16xf32>
    %24 = arith.addf %20, %23 : vector<1x16xf32>
    %25 = math.rsqrt %24 : vector<1x16xf32>
    %26 = vector.broadcast %25 : vector<1x16xf32> to vector<32x16xf32>
    %27 = arith.mulf %22, %26 : vector<32x16xf32>
    %c24 = arith.constant 24 : index
    %c0_10 = arith.constant 0 : index
    %28 = vector.load %arg2[%c24, %c0_10] : memref<536x128xf32, #tpu.memory_space<vmem>>, vector<5x32xf32>
    %c40 = arith.constant 40 : index
    %c0_11 = arith.constant 0 : index
    %29 = vector.load %arg2[%c40, %c0_11] : memref<536x128xf32, #tpu.memory_space<vmem>>, vector<32x4xf32>
    %30 = tpu.concatenate %27, %27 in 1 : vector<32x16xf32>, vector<32x16xf32> -> vector<32x32xf32>
    %31 = vector.extract_strided_slice %28 {offsets = [2, 0], sizes = [1, 32], strides = [1, 1]} : vector<5x32xf32> to vector<1x32xf32>
    %32 = vector.broadcast %31 : vector<1x32xf32> to vector<32x32xf32>
    %33 = arith.mulf %30, %32 : vector<32x32xf32>
    %c2_i32 = arith.constant 2 : i32
    %34 = tpu.dynamic_rotate %30 by %c2_i32 dim 0 : vector<32x32xf32>, i32 -> vector<32x32xf32>
    %35 = vector.extract_strided_slice %29 {offsets = [0, 0], sizes = [32, 1], strides = [1, 1]} : vector<32x4xf32> to vector<32x1xf32>
    %36 = vector.extract_strided_slice %28 {offsets = [0, 0], sizes = [1, 32], strides = [1, 1]} : vector<5x32xf32> to vector<1x32xf32>
    %37 = vector.broadcast %35 : vector<32x1xf32> to vector<32x32xf32>
    %38 = vector.broadcast %36 : vector<1x32xf32> to vector<32x32xf32>
    %39 = arith.mulf %37, %38 : vector<32x32xf32>
    %40 = arith.mulf %34, %39 : vector<32x32xf32>
    %41 = arith.addf %33, %40 : vector<32x32xf32>
    %c1_i32 = arith.constant 1 : i32
    %42 = tpu.dynamic_rotate %30 by %c1_i32 dim 0 : vector<32x32xf32>, i32 -> vector<32x32xf32>
    %43 = vector.extract_strided_slice %29 {offsets = [0, 1], sizes = [32, 1], strides = [1, 1]} : vector<32x4xf32> to vector<32x1xf32>
    %44 = vector.extract_strided_slice %28 {offsets = [1, 0], sizes = [1, 32], strides = [1, 1]} : vector<5x32xf32> to vector<1x32xf32>
    %45 = vector.broadcast %43 : vector<32x1xf32> to vector<32x32xf32>
    %46 = vector.broadcast %44 : vector<1x32xf32> to vector<32x32xf32>
    %47 = arith.mulf %45, %46 : vector<32x32xf32>
    %48 = arith.mulf %42, %47 : vector<32x32xf32>
    %49 = arith.addf %41, %48 : vector<32x32xf32>
    %c31_i32 = arith.constant 31 : i32
    %50 = tpu.dynamic_rotate %30 by %c31_i32 dim 0 : vector<32x32xf32>, i32 -> vector<32x32xf32>
    %51 = vector.extract_strided_slice %29 {offsets = [0, 2], sizes = [32, 1], strides = [1, 1]} : vector<32x4xf32> to vector<32x1xf32>
    %52 = vector.extract_strided_slice %28 {offsets = [3, 0], sizes = [1, 32], strides = [1, 1]} : vector<5x32xf32> to vector<1x32xf32>
    %53 = vector.broadcast %51 : vector<32x1xf32> to vector<32x32xf32>
    %54 = vector.broadcast %52 : vector<1x32xf32> to vector<32x32xf32>
    %55 = arith.mulf %53, %54 : vector<32x32xf32>
    %56 = arith.mulf %50, %55 : vector<32x32xf32>
    %57 = arith.addf %49, %56 : vector<32x32xf32>
    %c30_i32 = arith.constant 30 : i32
    %58 = tpu.dynamic_rotate %30 by %c30_i32 dim 0 : vector<32x32xf32>, i32 -> vector<32x32xf32>
    %59 = vector.extract_strided_slice %29 {offsets = [0, 3], sizes = [32, 1], strides = [1, 1]} : vector<32x4xf32> to vector<32x1xf32>
    %60 = vector.extract_strided_slice %28 {offsets = [4, 0], sizes = [1, 32], strides = [1, 1]} : vector<5x32xf32> to vector<1x32xf32>
    %61 = vector.broadcast %59 : vector<32x1xf32> to vector<32x32xf32>
    %62 = vector.broadcast %60 : vector<1x32xf32> to vector<32x32xf32>
    %63 = arith.mulf %61, %62 : vector<32x32xf32>
    %64 = arith.mulf %58, %63 : vector<32x32xf32>
    %65 = arith.addf %57, %64 : vector<32x32xf32>
    %c32 = arith.constant 32 : index
    %c0_12 = arith.constant 0 : index
    %66 = vector.load %arg2[%c32, %c0_12] : memref<536x128xf32, #tpu.memory_space<vmem>>, vector<1x32xf32>
    %67 = vector.broadcast %66 : vector<1x32xf32> to vector<32x32xf32>
    %68 = arith.addf %65, %67 : vector<32x32xf32>
    %c72 = arith.constant 72 : index
    %c0_13 = arith.constant 0 : index
    %69 = vector.load %arg2[%c72, %c0_13] : memref<536x128xf32, #tpu.memory_space<vmem>>, vector<32x16xf32>
    %70 = arith.truncf %68 : vector<32x32xf32> to vector<32x32xbf16>
    %71 = arith.truncf %69 : vector<32x16xf32> to vector<32x16xbf16>
    %cst_14 = arith.constant dense<0.000000e+00> : vector<32x16xf32>
    %72 = tpu.matmul %70, %71, %cst_14 {dimension_numbers = #tpu.dot_dimension_numbers<[1], [0], [0], [1], [0, 0, 1, 1], [], []>} : vector<32x32xbf16>, vector<32x16xbf16>, vector<32x16xf32> -> vector<32x16xf32>
    %c104 = arith.constant 104 : index
    %c0_15 = arith.constant 0 : index
    %73 = vector.load %arg2[%c104, %c0_15] : memref<536x128xf32, #tpu.memory_space<vmem>>, vector<1x16xf32>
    %74 = vector.broadcast %73 : vector<1x16xf32> to vector<32x16xf32>
    %75 = arith.addf %72, %74 : vector<32x16xf32>
    %cst_16 = arith.constant dense<0.000000e+00> : vector<16xf32>
    %76 = vector.multi_reduction <add>, %75, %cst_16 [0] : vector<32x16xf32> to vector<16xf32>
    %77 = vector.shape_cast %76 : vector<16xf32> to vector<1x16xf32>
    %78 = arith.mulf %75, %75 : vector<32x16xf32>
    %cst_17 = arith.constant dense<0.000000e+00> : vector<16xf32>
    %79 = vector.multi_reduction <add>, %78, %cst_17 [0] : vector<32x16xf32> to vector<16xf32>
    %80 = vector.shape_cast %79 : vector<16xf32> to vector<1x16xf32>
    %cst_18 = arith.constant 3.125000e-02 : f32
    %81 = vector.broadcast %cst_18 : f32 to vector<1x16xf32>
    %82 = arith.mulf %77, %81 : vector<1x16xf32>
    %cst_19 = arith.constant 3.125000e-02 : f32
    %83 = vector.broadcast %cst_19 : f32 to vector<1x16xf32>
    %84 = arith.mulf %80, %83 : vector<1x16xf32>
    %85 = arith.mulf %82, %82 : vector<1x16xf32>
    %86 = arith.subf %84, %85 : vector<1x16xf32>
    %cst_20 = arith.constant 0.000000e+00 : f32
    %87 = vector.broadcast %cst_20 : f32 to vector<1x16xf32>
    %88 = arith.maximumf %86, %87 : vector<1x16xf32>
    %89 = vector.broadcast %82 : vector<1x16xf32> to vector<32x16xf32>
    %90 = arith.subf %75, %89 : vector<32x16xf32>
    %cst_21 = arith.constant 9.99999974E-6 : f32
    %91 = vector.broadcast %cst_21 : f32 to vector<1x16xf32>
    %92 = arith.addf %88, %91 : vector<1x16xf32>
    %93 = math.rsqrt %92 : vector<1x16xf32>
    %94 = vector.broadcast %93 : vector<1x16xf32> to vector<32x16xf32>
    %95 = arith.mulf %90, %94 : vector<32x16xf32>
    %cst_22 = arith.constant 5.000000e-01 : f32
    %96 = vector.broadcast %cst_22 : f32 to vector<32x16xf32>
    %97 = arith.mulf %96, %95 : vector<32x16xf32>
    %cst_23 = arith.constant 4.471500e-02 : f32
    %98 = vector.broadcast %cst_23 : f32 to vector<32x16xf32>
    %99 = arith.mulf %98, %95 : vector<32x16xf32>
    %100 = arith.mulf %99, %95 : vector<32x16xf32>
    %101 = arith.mulf %100, %95 : vector<32x16xf32>
    %102 = arith.addf %95, %101 : vector<32x16xf32>
    %cst_24 = arith.constant 0.797884583 : f32
    %103 = vector.broadcast %cst_24 : f32 to vector<32x16xf32>
    %104 = arith.mulf %103, %102 : vector<32x16xf32>
    %105 = math.tanh %104 : vector<32x16xf32>
    %cst_25 = arith.constant 1.000000e+00 : f32
    %106 = vector.broadcast %cst_25 : f32 to vector<32x16xf32>
    %107 = arith.addf %106, %105 : vector<32x16xf32>
    %108 = arith.mulf %97, %107 : vector<32x16xf32>
    %c112 = arith.constant 112 : index
    %c0_26 = arith.constant 0 : index
    %109 = vector.load %arg2[%c112, %c0_26] : memref<536x128xf32, #tpu.memory_space<vmem>>, vector<32x32xf32>
    %cst_27 = arith.constant dense<0.000000e+00> : vector<32x16xf32>
    %110 = tpu.matmul %109, %108, %cst_27 {dimension_numbers = #tpu.dot_dimension_numbers<[1], [0], [0], [1], [0, 0, 1, 1], [], []>} : vector<32x32xf32>, vector<32x16xf32>, vector<32x16xf32> -> vector<32x16xf32>
    %111 = vector.extract_strided_slice %110 {offsets = [0, 0], sizes = [16, 16], strides = [1, 1]} : vector<32x16xf32> to vector<16x16xf32>
    %c144 = arith.constant 144 : index
    %c0_28 = arith.constant 0 : index
    %112 = vector.load %arg2[%c144, %c0_28] : memref<536x128xf32, #tpu.memory_space<vmem>>, vector<16x32xf32>
    %113 = arith.truncf %111 : vector<16x16xf32> to vector<16x16xbf16>
    %114 = arith.truncf %112 : vector<16x32xf32> to vector<16x32xbf16>
    %cst_29 = arith.constant dense<0.000000e+00> : vector<16x32xf32>
    %115 = tpu.matmul %113, %114, %cst_29 {dimension_numbers = #tpu.dot_dimension_numbers<[1], [0], [0], [1], [0, 0, 1, 1], [], []>} : vector<16x16xbf16>, vector<16x32xbf16>, vector<16x32xf32> -> vector<16x32xf32>
    %116 = vector.extract_strided_slice %110 {offsets = [16, 0], sizes = [16, 16], strides = [1, 1]} : vector<32x16xf32> to vector<16x16xf32>
    %c160 = arith.constant 160 : index
    %c0_30 = arith.constant 0 : index
    %117 = vector.load %arg2[%c160, %c0_30] : memref<536x128xf32, #tpu.memory_space<vmem>>, vector<16x32xf32>
    %118 = arith.truncf %116 : vector<16x16xf32> to vector<16x16xbf16>
    %119 = arith.truncf %117 : vector<16x32xf32> to vector<16x32xbf16>
    %cst_31 = arith.constant dense<0.000000e+00> : vector<16x32xf32>
    %120 = tpu.matmul %118, %119, %cst_31 {dimension_numbers = #tpu.dot_dimension_numbers<[1], [0], [0], [1], [0, 0, 1, 1], [], []>} : vector<16x16xbf16>, vector<16x32xbf16>, vector<16x32xf32> -> vector<16x32xf32>
    %121 = arith.addf %115, %120 : vector<16x32xf32>
    %c176 = arith.constant 176 : index
    %c0_32 = arith.constant 0 : index
    %122 = vector.load %arg2[%c176, %c0_32] : memref<536x128xf32, #tpu.memory_space<vmem>>, vector<1x32xf32>
    %123 = vector.broadcast %122 : vector<1x32xf32> to vector<16x32xf32>
    %124 = arith.addf %121, %123 : vector<16x32xf32>
    %cst_33 = arith.constant dense<0.000000e+00> : vector<32xf32>
    %125 = vector.multi_reduction <add>, %124, %cst_33 [0] : vector<16x32xf32> to vector<32xf32>
    %126 = vector.shape_cast %125 : vector<32xf32> to vector<1x32xf32>
    %127 = arith.mulf %124, %124 : vector<16x32xf32>
    %cst_34 = arith.constant dense<0.000000e+00> : vector<32xf32>
    %128 = vector.multi_reduction <add>, %127, %cst_34 [0] : vector<16x32xf32> to vector<32xf32>
    %129 = vector.shape_cast %128 : vector<32xf32> to vector<1x32xf32>
    %cst_35 = arith.constant 6.250000e-02 : f32
    %130 = vector.broadcast %cst_35 : f32 to vector<1x32xf32>
    %131 = arith.mulf %126, %130 : vector<1x32xf32>
    %cst_36 = arith.constant 6.250000e-02 : f32
    %132 = vector.broadcast %cst_36 : f32 to vector<1x32xf32>
    %133 = arith.mulf %129, %132 : vector<1x32xf32>
    %134 = arith.mulf %131, %131 : vector<1x32xf32>
    %135 = arith.subf %133, %134 : vector<1x32xf32>
    %cst_37 = arith.constant 0.000000e+00 : f32
    %136 = vector.broadcast %cst_37 : f32 to vector<1x32xf32>
    %137 = arith.maximumf %135, %136 : vector<1x32xf32>
    %138 = vector.broadcast %131 : vector<1x32xf32> to vector<16x32xf32>
    %139 = arith.subf %124, %138 : vector<16x32xf32>
    %cst_38 = arith.constant 9.99999974E-6 : f32
    %140 = vector.broadcast %cst_38 : f32 to vector<1x32xf32>
    %141 = arith.addf %137, %140 : vector<1x32xf32>
    %142 = math.rsqrt %141 : vector<1x32xf32>
    %143 = vector.broadcast %142 : vector<1x32xf32> to vector<16x32xf32>
    %144 = arith.mulf %139, %143 : vector<16x32xf32>
    %c184 = arith.constant 184 : index
    %c0_39 = arith.constant 0 : index
    %145 = vector.load %arg2[%c184, %c0_39] : memref<536x128xf32, #tpu.memory_space<vmem>>, vector<5x64xf32>
    %c200 = arith.constant 200 : index
    %c0_40 = arith.constant 0 : index
    %146 = vector.load %arg2[%c200, %c0_40] : memref<536x128xf32, #tpu.memory_space<vmem>>, vector<16x4xf32>
    %147 = tpu.concatenate %144, %144 in 1 : vector<16x32xf32>, vector<16x32xf32> -> vector<16x64xf32>
    %148 = vector.extract_strided_slice %145 {offsets = [2, 0], sizes = [1, 64], strides = [1, 1]} : vector<5x64xf32> to vector<1x64xf32>
    %149 = vector.broadcast %148 : vector<1x64xf32> to vector<16x64xf32>
    %150 = arith.mulf %147, %149 : vector<16x64xf32>
    %c2_i32_41 = arith.constant 2 : i32
    %151 = tpu.dynamic_rotate %147 by %c2_i32_41 dim 0 : vector<16x64xf32>, i32 -> vector<16x64xf32>
    %152 = vector.extract_strided_slice %146 {offsets = [0, 0], sizes = [16, 1], strides = [1, 1]} : vector<16x4xf32> to vector<16x1xf32>
    %153 = vector.extract_strided_slice %145 {offsets = [0, 0], sizes = [1, 64], strides = [1, 1]} : vector<5x64xf32> to vector<1x64xf32>
    %154 = vector.broadcast %152 : vector<16x1xf32> to vector<16x64xf32>
    %155 = vector.broadcast %153 : vector<1x64xf32> to vector<16x64xf32>
    %156 = arith.mulf %154, %155 : vector<16x64xf32>
    %157 = arith.mulf %151, %156 : vector<16x64xf32>
    %158 = arith.addf %150, %157 : vector<16x64xf32>
    %c1_i32_42 = arith.constant 1 : i32
    %159 = tpu.dynamic_rotate %147 by %c1_i32_42 dim 0 : vector<16x64xf32>, i32 -> vector<16x64xf32>
    %160 = vector.extract_strided_slice %146 {offsets = [0, 1], sizes = [16, 1], strides = [1, 1]} : vector<16x4xf32> to vector<16x1xf32>
    %161 = vector.extract_strided_slice %145 {offsets = [1, 0], sizes = [1, 64], strides = [1, 1]} : vector<5x64xf32> to vector<1x64xf32>
    %162 = vector.broadcast %160 : vector<16x1xf32> to vector<16x64xf32>
    %163 = vector.broadcast %161 : vector<1x64xf32> to vector<16x64xf32>
    %164 = arith.mulf %162, %163 : vector<16x64xf32>
    %165 = arith.mulf %159, %164 : vector<16x64xf32>
    %166 = arith.addf %158, %165 : vector<16x64xf32>
    %c15_i32 = arith.constant 15 : i32
    %167 = tpu.dynamic_rotate %147 by %c15_i32 dim 0 : vector<16x64xf32>, i32 -> vector<16x64xf32>
    %168 = vector.extract_strided_slice %146 {offsets = [0, 2], sizes = [16, 1], strides = [1, 1]} : vector<16x4xf32> to vector<16x1xf32>
    %169 = vector.extract_strided_slice %145 {offsets = [3, 0], sizes = [1, 64], strides = [1, 1]} : vector<5x64xf32> to vector<1x64xf32>
    %170 = vector.broadcast %168 : vector<16x1xf32> to vector<16x64xf32>
    %171 = vector.broadcast %169 : vector<1x64xf32> to vector<16x64xf32>
    %172 = arith.mulf %170, %171 : vector<16x64xf32>
    %173 = arith.mulf %167, %172 : vector<16x64xf32>
    %174 = arith.addf %166, %173 : vector<16x64xf32>
    %c14_i32 = arith.constant 14 : i32
    %175 = tpu.dynamic_rotate %147 by %c14_i32 dim 0 : vector<16x64xf32>, i32 -> vector<16x64xf32>
    %176 = vector.extract_strided_slice %146 {offsets = [0, 3], sizes = [16, 1], strides = [1, 1]} : vector<16x4xf32> to vector<16x1xf32>
    %177 = vector.extract_strided_slice %145 {offsets = [4, 0], sizes = [1, 64], strides = [1, 1]} : vector<5x64xf32> to vector<1x64xf32>
    %178 = vector.broadcast %176 : vector<16x1xf32> to vector<16x64xf32>
    %179 = vector.broadcast %177 : vector<1x64xf32> to vector<16x64xf32>
    %180 = arith.mulf %178, %179 : vector<16x64xf32>
    %181 = arith.mulf %175, %180 : vector<16x64xf32>
    %182 = arith.addf %174, %181 : vector<16x64xf32>
    %c192 = arith.constant 192 : index
    %c0_43 = arith.constant 0 : index
    %183 = vector.load %arg2[%c192, %c0_43] : memref<536x128xf32, #tpu.memory_space<vmem>>, vector<1x64xf32>
    %184 = vector.broadcast %183 : vector<1x64xf32> to vector<16x64xf32>
    %185 = arith.addf %182, %184 : vector<16x64xf32>
    %c216 = arith.constant 216 : index
    %c0_44 = arith.constant 0 : index
    %186 = vector.load %arg2[%c216, %c0_44] : memref<536x128xf32, #tpu.memory_space<vmem>>, vector<64x32xf32>
    %187 = arith.truncf %185 : vector<16x64xf32> to vector<16x64xbf16>
    %188 = arith.truncf %186 : vector<64x32xf32> to vector<64x32xbf16>
    %cst_45 = arith.constant dense<0.000000e+00> : vector<16x32xf32>
    %189 = tpu.matmul %187, %188, %cst_45 {dimension_numbers = #tpu.dot_dimension_numbers<[1], [0], [0], [1], [0, 0, 1, 1], [], []>} : vector<16x64xbf16>, vector<64x32xbf16>, vector<16x32xf32> -> vector<16x32xf32>
    %c280 = arith.constant 280 : index
    %c0_46 = arith.constant 0 : index
    %190 = vector.load %arg2[%c280, %c0_46] : memref<536x128xf32, #tpu.memory_space<vmem>>, vector<1x32xf32>
    %191 = vector.broadcast %190 : vector<1x32xf32> to vector<16x32xf32>
    %192 = arith.addf %189, %191 : vector<16x32xf32>
    %cst_47 = arith.constant dense<0.000000e+00> : vector<32xf32>
    %193 = vector.multi_reduction <add>, %192, %cst_47 [0] : vector<16x32xf32> to vector<32xf32>
    %194 = vector.shape_cast %193 : vector<32xf32> to vector<1x32xf32>
    %195 = arith.mulf %192, %192 : vector<16x32xf32>
    %cst_48 = arith.constant dense<0.000000e+00> : vector<32xf32>
    %196 = vector.multi_reduction <add>, %195, %cst_48 [0] : vector<16x32xf32> to vector<32xf32>
    %197 = vector.shape_cast %196 : vector<32xf32> to vector<1x32xf32>
    %cst_49 = arith.constant 6.250000e-02 : f32
    %198 = vector.broadcast %cst_49 : f32 to vector<1x32xf32>
    %199 = arith.mulf %194, %198 : vector<1x32xf32>
    %cst_50 = arith.constant 6.250000e-02 : f32
    %200 = vector.broadcast %cst_50 : f32 to vector<1x32xf32>
    %201 = arith.mulf %197, %200 : vector<1x32xf32>
    %202 = arith.mulf %199, %199 : vector<1x32xf32>
    %203 = arith.subf %201, %202 : vector<1x32xf32>
    %cst_51 = arith.constant 0.000000e+00 : f32
    %204 = vector.broadcast %cst_51 : f32 to vector<1x32xf32>
    %205 = arith.maximumf %203, %204 : vector<1x32xf32>
    %206 = vector.broadcast %199 : vector<1x32xf32> to vector<16x32xf32>
    %207 = arith.subf %192, %206 : vector<16x32xf32>
    %cst_52 = arith.constant 9.99999974E-6 : f32
    %208 = vector.broadcast %cst_52 : f32 to vector<1x32xf32>
    %209 = arith.addf %205, %208 : vector<1x32xf32>
    %210 = math.rsqrt %209 : vector<1x32xf32>
    %211 = vector.broadcast %210 : vector<1x32xf32> to vector<16x32xf32>
    %212 = arith.mulf %207, %211 : vector<16x32xf32>
    %cst_53 = arith.constant 5.000000e-01 : f32
    %213 = vector.broadcast %cst_53 : f32 to vector<16x32xf32>
    %214 = arith.mulf %213, %212 : vector<16x32xf32>
    %cst_54 = arith.constant 4.471500e-02 : f32
    %215 = vector.broadcast %cst_54 : f32 to vector<16x32xf32>
    %216 = arith.mulf %215, %212 : vector<16x32xf32>
    %217 = arith.mulf %216, %212 : vector<16x32xf32>
    %218 = arith.mulf %217, %212 : vector<16x32xf32>
    %219 = arith.addf %212, %218 : vector<16x32xf32>
    %cst_55 = arith.constant 0.797884583 : f32
    %220 = vector.broadcast %cst_55 : f32 to vector<16x32xf32>
    %221 = arith.mulf %220, %219 : vector<16x32xf32>
    %222 = math.tanh %221 : vector<16x32xf32>
    %cst_56 = arith.constant 1.000000e+00 : f32
    %223 = vector.broadcast %cst_56 : f32 to vector<16x32xf32>
    %224 = arith.addf %223, %222 : vector<16x32xf32>
    %225 = arith.mulf %214, %224 : vector<16x32xf32>
    %c288 = arith.constant 288 : index
    %c0_57 = arith.constant 0 : index
    %226 = vector.load %arg2[%c288, %c0_57] : memref<536x128xf32, #tpu.memory_space<vmem>>, vector<16x16xf32>
    %cst_58 = arith.constant dense<0.000000e+00> : vector<16x32xf32>
    %227 = tpu.matmul %226, %225, %cst_58 {dimension_numbers = #tpu.dot_dimension_numbers<[1], [0], [0], [1], [0, 0, 1, 1], [], []>} : vector<16x16xf32>, vector<16x32xf32>, vector<16x32xf32> -> vector<16x32xf32>
    %228 = vector.extract_strided_slice %227 {offsets = [0, 0], sizes = [8, 32], strides = [1, 1]} : vector<16x32xf32> to vector<8x32xf32>
    %c304 = arith.constant 304 : index
    %c0_59 = arith.constant 0 : index
    %229 = vector.load %arg2[%c304, %c0_59] : memref<536x128xf32, #tpu.memory_space<vmem>>, vector<32x64xf32>
    %230 = arith.truncf %228 : vector<8x32xf32> to vector<8x32xbf16>
    %231 = arith.truncf %229 : vector<32x64xf32> to vector<32x64xbf16>
    %cst_60 = arith.constant dense<0.000000e+00> : vector<8x64xf32>
    %232 = tpu.matmul %230, %231, %cst_60 {dimension_numbers = #tpu.dot_dimension_numbers<[1], [0], [0], [1], [0, 0, 1, 1], [], []>} : vector<8x32xbf16>, vector<32x64xbf16>, vector<8x64xf32> -> vector<8x64xf32>
    %233 = vector.extract_strided_slice %227 {offsets = [8, 0], sizes = [8, 32], strides = [1, 1]} : vector<16x32xf32> to vector<8x32xf32>
    %c336 = arith.constant 336 : index
    %c0_61 = arith.constant 0 : index
    %234 = vector.load %arg2[%c336, %c0_61] : memref<536x128xf32, #tpu.memory_space<vmem>>, vector<32x64xf32>
    %235 = arith.truncf %233 : vector<8x32xf32> to vector<8x32xbf16>
    %236 = arith.truncf %234 : vector<32x64xf32> to vector<32x64xbf16>
    %cst_62 = arith.constant dense<0.000000e+00> : vector<8x64xf32>
    %237 = tpu.matmul %235, %236, %cst_62 {dimension_numbers = #tpu.dot_dimension_numbers<[1], [0], [0], [1], [0, 0, 1, 1], [], []>} : vector<8x32xbf16>, vector<32x64xbf16>, vector<8x64xf32> -> vector<8x64xf32>
    %238 = arith.addf %232, %237 : vector<8x64xf32>
    %c368 = arith.constant 368 : index
    %c0_63 = arith.constant 0 : index
    %239 = vector.load %arg2[%c368, %c0_63] : memref<536x128xf32, #tpu.memory_space<vmem>>, vector<1x64xf32>
    %240 = vector.broadcast %239 : vector<1x64xf32> to vector<8x64xf32>
    %241 = arith.addf %238, %240 : vector<8x64xf32>
    %cst_64 = arith.constant dense<0.000000e+00> : vector<64xf32>
    %242 = vector.multi_reduction <add>, %241, %cst_64 [0] : vector<8x64xf32> to vector<64xf32>
    %243 = vector.shape_cast %242 : vector<64xf32> to vector<1x64xf32>
    %244 = arith.mulf %241, %241 : vector<8x64xf32>
    %cst_65 = arith.constant dense<0.000000e+00> : vector<64xf32>
    %245 = vector.multi_reduction <add>, %244, %cst_65 [0] : vector<8x64xf32> to vector<64xf32>
    %246 = vector.shape_cast %245 : vector<64xf32> to vector<1x64xf32>
    %cst_66 = arith.constant 1.250000e-01 : f32
    %247 = vector.broadcast %cst_66 : f32 to vector<1x64xf32>
    %248 = arith.mulf %243, %247 : vector<1x64xf32>
    %cst_67 = arith.constant 1.250000e-01 : f32
    %249 = vector.broadcast %cst_67 : f32 to vector<1x64xf32>
    %250 = arith.mulf %246, %249 : vector<1x64xf32>
    %251 = arith.mulf %248, %248 : vector<1x64xf32>
    %252 = arith.subf %250, %251 : vector<1x64xf32>
    %cst_68 = arith.constant 0.000000e+00 : f32
    %253 = vector.broadcast %cst_68 : f32 to vector<1x64xf32>
    %254 = arith.maximumf %252, %253 : vector<1x64xf32>
    %255 = vector.broadcast %248 : vector<1x64xf32> to vector<8x64xf32>
    %256 = arith.subf %241, %255 : vector<8x64xf32>
    %cst_69 = arith.constant 9.99999974E-6 : f32
    %257 = vector.broadcast %cst_69 : f32 to vector<1x64xf32>
    %258 = arith.addf %254, %257 : vector<1x64xf32>
    %259 = math.rsqrt %258 : vector<1x64xf32>
    %260 = vector.broadcast %259 : vector<1x64xf32> to vector<8x64xf32>
    %261 = arith.mulf %256, %260 : vector<8x64xf32>
    %c376 = arith.constant 376 : index
    %c0_70 = arith.constant 0 : index
    %262 = vector.load %arg2[%c376, %c0_70] : memref<536x128xf32, #tpu.memory_space<vmem>>, vector<5x128xf32>
    %c392 = arith.constant 392 : index
    %c0_71 = arith.constant 0 : index
    %263 = vector.load %arg2[%c392, %c0_71] : memref<536x128xf32, #tpu.memory_space<vmem>>, vector<8x4xf32>
    %264 = tpu.concatenate %261, %261 in 1 : vector<8x64xf32>, vector<8x64xf32> -> vector<8x128xf32>
    %265 = vector.extract_strided_slice %262 {offsets = [2, 0], sizes = [1, 128], strides = [1, 1]} : vector<5x128xf32> to vector<1x128xf32>
    %266 = vector.broadcast %265 : vector<1x128xf32> to vector<8x128xf32>
    %267 = arith.mulf %264, %266 : vector<8x128xf32>
    %c2_i32_72 = arith.constant 2 : i32
    %268 = tpu.dynamic_rotate %264 by %c2_i32_72 dim 0 : vector<8x128xf32>, i32 -> vector<8x128xf32>
    %269 = vector.extract_strided_slice %263 {offsets = [0, 0], sizes = [8, 1], strides = [1, 1]} : vector<8x4xf32> to vector<8x1xf32>
    %270 = vector.extract_strided_slice %262 {offsets = [0, 0], sizes = [1, 128], strides = [1, 1]} : vector<5x128xf32> to vector<1x128xf32>
    %271 = vector.broadcast %269 : vector<8x1xf32> to vector<8x128xf32>
    %272 = vector.broadcast %270 : vector<1x128xf32> to vector<8x128xf32>
    %273 = arith.mulf %271, %272 : vector<8x128xf32>
    %274 = arith.mulf %268, %273 : vector<8x128xf32>
    %275 = arith.addf %267, %274 : vector<8x128xf32>
    %c1_i32_73 = arith.constant 1 : i32
    %276 = tpu.dynamic_rotate %264 by %c1_i32_73 dim 0 : vector<8x128xf32>, i32 -> vector<8x128xf32>
    %277 = vector.extract_strided_slice %263 {offsets = [0, 1], sizes = [8, 1], strides = [1, 1]} : vector<8x4xf32> to vector<8x1xf32>
    %278 = vector.extract_strided_slice %262 {offsets = [1, 0], sizes = [1, 128], strides = [1, 1]} : vector<5x128xf32> to vector<1x128xf32>
    %279 = vector.broadcast %277 : vector<8x1xf32> to vector<8x128xf32>
    %280 = vector.broadcast %278 : vector<1x128xf32> to vector<8x128xf32>
    %281 = arith.mulf %279, %280 : vector<8x128xf32>
    %282 = arith.mulf %276, %281 : vector<8x128xf32>
    %283 = arith.addf %275, %282 : vector<8x128xf32>
    %c7_i32 = arith.constant 7 : i32
    %284 = tpu.dynamic_rotate %264 by %c7_i32 dim 0 : vector<8x128xf32>, i32 -> vector<8x128xf32>
    %285 = vector.extract_strided_slice %263 {offsets = [0, 2], sizes = [8, 1], strides = [1, 1]} : vector<8x4xf32> to vector<8x1xf32>
    %286 = vector.extract_strided_slice %262 {offsets = [3, 0], sizes = [1, 128], strides = [1, 1]} : vector<5x128xf32> to vector<1x128xf32>
    %287 = vector.broadcast %285 : vector<8x1xf32> to vector<8x128xf32>
    %288 = vector.broadcast %286 : vector<1x128xf32> to vector<8x128xf32>
    %289 = arith.mulf %287, %288 : vector<8x128xf32>
    %290 = arith.mulf %284, %289 : vector<8x128xf32>
    %291 = arith.addf %283, %290 : vector<8x128xf32>
    %c6_i32 = arith.constant 6 : i32
    %292 = tpu.dynamic_rotate %264 by %c6_i32 dim 0 : vector<8x128xf32>, i32 -> vector<8x128xf32>
    %293 = vector.extract_strided_slice %263 {offsets = [0, 3], sizes = [8, 1], strides = [1, 1]} : vector<8x4xf32> to vector<8x1xf32>
    %294 = vector.extract_strided_slice %262 {offsets = [4, 0], sizes = [1, 128], strides = [1, 1]} : vector<5x128xf32> to vector<1x128xf32>
    %295 = vector.broadcast %293 : vector<8x1xf32> to vector<8x128xf32>
    %296 = vector.broadcast %294 : vector<1x128xf32> to vector<8x128xf32>
    %297 = arith.mulf %295, %296 : vector<8x128xf32>
    %298 = arith.mulf %292, %297 : vector<8x128xf32>
    %299 = arith.addf %291, %298 : vector<8x128xf32>
    %c384 = arith.constant 384 : index
    %c0_74 = arith.constant 0 : index
    %300 = vector.load %arg2[%c384, %c0_74] : memref<536x128xf32, #tpu.memory_space<vmem>>, vector<1x128xf32>
    %301 = vector.broadcast %300 : vector<1x128xf32> to vector<8x128xf32>
    %302 = arith.addf %299, %301 : vector<8x128xf32>
    %c400 = arith.constant 400 : index
    %c0_75 = arith.constant 0 : index
    %303 = vector.load %arg2[%c400, %c0_75] : memref<536x128xf32, #tpu.memory_space<vmem>>, vector<128x64xf32>
    %304 = arith.truncf %302 : vector<8x128xf32> to vector<8x128xbf16>
    %305 = arith.truncf %303 : vector<128x64xf32> to vector<128x64xbf16>
    %cst_76 = arith.constant dense<0.000000e+00> : vector<8x64xf32>
    %306 = tpu.matmul %304, %305, %cst_76 {dimension_numbers = #tpu.dot_dimension_numbers<[1], [0], [0], [1], [0, 0, 1, 1], [], []>} : vector<8x128xbf16>, vector<128x64xbf16>, vector<8x64xf32> -> vector<8x64xf32>
    %c528 = arith.constant 528 : index
    %c0_77 = arith.constant 0 : index
    %307 = vector.load %arg2[%c528, %c0_77] : memref<536x128xf32, #tpu.memory_space<vmem>>, vector<1x64xf32>
    %308 = vector.broadcast %307 : vector<1x64xf32> to vector<8x64xf32>
    %309 = arith.addf %306, %308 : vector<8x64xf32>
    %cst_78 = arith.constant dense<0.000000e+00> : vector<64xf32>
    %310 = vector.multi_reduction <add>, %309, %cst_78 [0] : vector<8x64xf32> to vector<64xf32>
    %311 = vector.shape_cast %310 : vector<64xf32> to vector<1x64xf32>
    %312 = arith.mulf %309, %309 : vector<8x64xf32>
    %cst_79 = arith.constant dense<0.000000e+00> : vector<64xf32>
    %313 = vector.multi_reduction <add>, %312, %cst_79 [0] : vector<8x64xf32> to vector<64xf32>
    %314 = vector.shape_cast %313 : vector<64xf32> to vector<1x64xf32>
    %cst_80 = arith.constant 1.250000e-01 : f32
    %315 = vector.broadcast %cst_80 : f32 to vector<1x64xf32>
    %316 = arith.mulf %311, %315 : vector<1x64xf32>
    %cst_81 = arith.constant 1.250000e-01 : f32
    %317 = vector.broadcast %cst_81 : f32 to vector<1x64xf32>
    %318 = arith.mulf %314, %317 : vector<1x64xf32>
    %319 = arith.mulf %316, %316 : vector<1x64xf32>
    %320 = arith.subf %318, %319 : vector<1x64xf32>
    %cst_82 = arith.constant 0.000000e+00 : f32
    %321 = vector.broadcast %cst_82 : f32 to vector<1x64xf32>
    %322 = arith.maximumf %320, %321 : vector<1x64xf32>
    %323 = vector.broadcast %316 : vector<1x64xf32> to vector<8x64xf32>
    %324 = arith.subf %309, %323 : vector<8x64xf32>
    %cst_83 = arith.constant 9.99999974E-6 : f32
    %325 = vector.broadcast %cst_83 : f32 to vector<1x64xf32>
    %326 = arith.addf %322, %325 : vector<1x64xf32>
    %327 = math.rsqrt %326 : vector<1x64xf32>
    %328 = vector.broadcast %327 : vector<1x64xf32> to vector<8x64xf32>
    %329 = arith.mulf %324, %328 : vector<8x64xf32>
    %cst_84 = arith.constant 5.000000e-01 : f32
    %330 = vector.broadcast %cst_84 : f32 to vector<8x64xf32>
    %331 = arith.mulf %330, %329 : vector<8x64xf32>
    %cst_85 = arith.constant 4.471500e-02 : f32
    %332 = vector.broadcast %cst_85 : f32 to vector<8x64xf32>
    %333 = arith.mulf %332, %329 : vector<8x64xf32>
    %334 = arith.mulf %333, %329 : vector<8x64xf32>
    %335 = arith.mulf %334, %329 : vector<8x64xf32>
    %336 = arith.addf %329, %335 : vector<8x64xf32>
    %cst_86 = arith.constant 0.797884583 : f32
    %337 = vector.broadcast %cst_86 : f32 to vector<8x64xf32>
    %338 = arith.mulf %337, %336 : vector<8x64xf32>
    %339 = math.tanh %338 : vector<8x64xf32>
    %cst_87 = arith.constant 1.000000e+00 : f32
    %340 = vector.broadcast %cst_87 : f32 to vector<8x64xf32>
    %341 = arith.addf %340, %339 : vector<8x64xf32>
    %342 = arith.mulf %331, %341 : vector<8x64xf32>
    %c0_88 = arith.constant 0 : index
    %c0_89 = arith.constant 0 : index
    %343 = vector.load %arg3[%c0_88, %c0_89] : memref<8x64xf32, #tpu.memory_space<vmem>>, vector<8x64xf32>
    tpu.vector_store %arg3[%c0_88, %c0_89], %342 {strides = array<i32>} : memref<8x64xf32, #tpu.memory_space<vmem>>, vector<8x64xf32>,
    return
  }
  func.func @transform_0(%arg0: i32) -> (i32, i32) {
    %c0_i32 = arith.constant 0 : i32
    %c0_i32_0 = arith.constant 0 : i32
    %c0_i32_1 = arith.constant 0 : i32
    return %c0_i32, %c0_i32_0 : i32, i32
  }
  func.func @transform_1(%arg0: i32) -> (i32, i32) {
    %c0_i32 = arith.constant 0 : i32
    %c0_i32_0 = arith.constant 0 : i32
    %c0_i32_1 = arith.constant 0 : i32
    return %c0_i32, %c0_i32_0 : i32, i32
  }
  func.func @transform_2(%arg0: i32) -> (i32, i32) {
    %c0_i32 = arith.constant 0 : i32
    %c0_i32_0 = arith.constant 0 : i32
    %c0_i32_1 = arith.constant 0 : i32
    return %c0_i32, %c0_i32_0 : i32, i32
  }
}

</mosaic_0001>

<bundles_post_ra>
// kernel: tpu_custom_call.1
= control target key start
LH: loop header
LB: loop body
LE: loop exit
PB: predicated region body
PF: predicated region fallthrough
CT: control target
= control target key end

     0   :  { %7 = vsyncpa [#allocation3], 0  ;;  %s1449_s0 = inlined_call_operand.vmem [shape: f32[32,16], index: 0, kind: input, shape index: {}]   ;;  %s1450_s1 = inlined_call_operand.hbm [shape: f32[536,128], index: 1, kind: input, shape index: {}]   ;;  %s1451_s2 = inlined_call_operand.hbm [shape: f32[8,64], index: 2, kind: output, shape index: {}]  }
   0x1   :  { %8 = vsyncpa [#allocation4], 0  ;;  %s15_s11 = sshll.u32 %s1450_s1, 4  ;;  %s1163_s12 = smov [#allocation2]   ;;  %s16_s11 = int_to_ptr.hbm [resolvable:$true] %s15_s11 }
   0x2   :  { %s17_s13 = sshll.u32 %s1163_s12, 4  ;;  %s1164_s14 = smov 128   ;;  %s18_s13 = int_to_ptr.vmem [resolvable:$true] %s17_s13 }
   0x3   :  { %s1165_s15 = smov 8  }
   0x4   :  { %23 = dma.hbm_to_vmem [thread:$0]  %s16_s11, 8576, %s18_s13, [#allocation3], %s1164_s14, %s1164_s14, %s1165_s15  }
   0x5   :  { %1159 = dma.done.wait [#allocation3], 8576  }
   0x6   :  { %1160 = vsyncadd [#allocation3], 4294958720  ;;  %v33_v0 = vld [vmem:[#allocation2] sm:$0xff]  ;;  %v34_v1 = vld [vmem:[#allocation2 + $0x8] sm:$0xff]  ;;  %vm40_vm0 = vcmask 130048   ;;  %v1166_v9 = vmov 0  }
   0x7   :  { %v29_v2 = vld [vmem:[%s1449_s0] sm:$0xff]  ;;  %v37_v3 = vpack.c.bf16 %v34_v1, %v33_v0  ;;  %v30_v4 = vld [vmem:[%s1449_s0 + $0x8] sm:$0xff]  ;;  %v31_v5 = vld [vmem:[%s1449_s0 + $0x10] sm:$0xff]  ;;  %1049 = vset.pattern.permute.xlu1 %v1166_v9  ;;  %1050 = vset.pattern.permute.xlu2 %v1166_v9  ;;  %v1167_v13 = vmov 1   ;;  %v1168_v25 = vmov 2   ;;  %v1169_v31 = vmov 3  }
   0x8   :  { %v32_v6 = vld [vmem:[%s1449_s0 + $0x18] sm:$0xff]  ;;  %v35_v7 = vpack.c.bf16 %v30_v4, %v29_v2  ;;  %v121_v10 = vld [vmem:[#allocation2 + $0x28] sm:$0xff]  ;;  %v1076_v12 = vld [vmem:[#allocation2 + $0x10] ss:$0 sm:$0xff]  ;;  %1051 = vset.pattern.permute.xlu0 %v1167_v13  ;;  %s1170_s0 = smov 16   ;;  %vm324_vm8 = vcmask 261120  }
   0x9   :  { %v36_v8 = vpack.c.bf16 %v32_v6, %v31_v5  ;;  %54 = vmatpush.bf16.msra.mxu0 %v37_v3  ;;  %1037 = vmatpush.bf16.msra.mxu3 %v37_v3  ;;  %v1209_v14 = vld [vmem:[#allocation2 + $0x30] sm:$0xff]  ;;  %v123_v41 = vld [vmem:[#allocation2 + $0x38] sm:$0xff]  ;;  %s1171_s23 = smov 32   ;;  %vm684_vm15 = vcmask 523264   ;;  %s1172_s24 = smov 64  }
   0xa   :  { %163 = vperm.xlu1 %1049, %v121_v10   ;;  %168 = vperm.xlu2 %1050, %v1209_v14   ;;  %s1173_s25 = smov [#allocation5]   ;;  %s1012_s29 = sshll.u32 %s1451_s2, 4  ;;  %s1013_s29 = int_to_ptr.hbm [resolvable:$true] %s1012_s29 }
   0xb   :  { %204 = vperm.xlu0 %1051, %v121_v10   ;;  %s1010_s26 = sshll.u32 %s1173_s25, 4  ;;  %s1011_s26 = int_to_ptr.vmem [resolvable:$true] %s1010_s26 }
   0xc   :  { %1022 = vmatmul.msk.bf16.vlgmr.msra.gmra.mxu0 %vm40_vm0, %v35_v7  ;;  %1023 = vmatmul.msk.bf16.vlgmr.msra.gmra.mxu3 %vm40_vm0, %v36_v8 }
  0x12   :  { %1052 = vset.pattern.permute.xlu1 %v1167_v13  ;;  %1053 = vset.pattern.permute.xlu2 %v1168_v25 }
  0x13   :  { %208 = vperm.xlu1 %1052, %v1209_v14   ;;  %242 = vperm.xlu2 %1053, %v121_v10  }
  0x14   :  { %1056 = vset.pattern.permute.xlu0 %v1169_v31 }
  0x1b   :  { %1054 = vset.pattern.permute.xlu1 %v1168_v25  ;;  %1055 = vset.pattern.permute.xlu2 %v1169_v31 }
  0x1c   :  { %246 = vperm.xlu1 %1054, %v1209_v14   ;;  %280 = vperm.xlu2 %1055, %v121_v10  }
  0x24   :  { %1057 = vset.pattern.permute.xlu1 %v1166_v9  ;;  %1058 = vset.pattern.permute.xlu2 %v1166_v9 }
  0x25   :  { %173 = vperm.xlu1 %1057, %v123_v41  }
  0x2d   :  { %1059 = vset.pattern.permute.xlu1 %v1167_v13 }
  0x89   :  { %v56_v11 = vpop.f32.mrf.mxu0 }
  0x8a   :  { %v1214_v15 = vadd.f32 %v1076_v12, %v56_v11  ;;  %v124_v11 = vld [vmem:[#allocation2 + $0x40] sm:$0xff] }
  0x8c   :  { %v79_v18 = vmul.f32 %v1214_v15, %v1214_v15  ;;  %v66_v21 = vsel %vm40_vm0, %v1214_v15, 0.0 }
  0x8e   :  { %v83_v26 = vsel %vm40_vm0, %v79_v18, 0.0 }
  0x8f   :  { %v61_v16 = vpop.f32.mrf.mxu3 }
  0x90   :  { %v1218_v19 = vadd.f32 %v1076_v12, %v61_v16 }
  0x91   :  { %v58_v17 = vpop.f32.mrf.mxu0 }
  0x92   :  { %v1220_v20 = vadd.f32 %v1076_v12, %v58_v17  ;;  %v81_v27 = vmul.f32 %v1218_v19, %v1218_v19  ;;  %v69_v32 = vsel %vm40_vm0, %v1218_v19, 0.0  ;;  %v169_v17 = vpop.permute.xlu2 %168 }
  0x94   :  { %v67_v22 = vsel %vm40_vm0, %v1220_v20, 0.0  ;;  %v80_v23 = vmul.f32 %v1220_v20, %v1220_v20  ;;  %v86_v35 = vsel %vm40_vm0, %v81_v27, 0.0 }
  0x95   :  { %v68_v24 = vadd.f32 %v67_v22, %v66_v21  ;;  %v316_v22 = vld [vmem:[#allocation2 + $0x58] sm:$0xff] }
  0x96   :  { %v84_v28 = vsel %vm40_vm0, %v80_v23, 0.0  ;;  %v317_v23 = vld [vmem:[#allocation2 + $0x60] sm:$0xff] }
  0x97   :  { %v85_v29 = vadd.f32 %v84_v28, %v83_v26  ;;  %v63_v30 = vpop.f32.mrf.mxu3  ;;  %v70_v34 = vadd.f32 %v69_v32, %v68_v24  ;;  %v314_v24 = vld [vmem:[#allocation2 + $0x48] sm:$0xff]  ;;  %v205_v26 = vpop.permute.xlu0 %204  ;;  %v321_v27 = vpack.c.bf16 %v317_v23, %v316_v22  ;;  %v315_v28 = vld [vmem:[#allocation2 + $0x50] sm:$0xff] }
  0x98   :  { %v64_v33 = vadd.f32 %v1076_v12, %v63_v30  ;;  %v154_v30 = vlaneseq }
  0x99   :  { %v87_v39 = vadd.f32 %v86_v35, %v85_v29  ;;  %337 = vmatpush.bf16.msra.mxu1 %v321_v27  ;;  %v320_v29 = vpack.c.bf16 %v315_v28, %v314_v24 }
  0x9a   :  { %v71_v36 = vsel %vm40_vm0, %v64_v33, 0.0  ;;  %v82_v37 = vmul.f32 %v64_v33, %v64_v33  ;;  %v243_v18 = vpop.permute.xlu2 %242 }
  0x9b   :  { %v72_v38 = vadd.f32 %v71_v36, %v70_v34  ;;  %v120_v34 = vld [vmem:[#allocation2 + $0x18] sm:$0x1f] }
  0x9c   :  { %v88_v40 = vsel %vm40_vm0, %v82_v37, 0.0 }
  0x9d   :  { %v73_v42 = vrot.slane %v72_v38, 4  ;;  %v89_v43 = vadd.f32 %v88_v40, %v87_v39  ;;  %338 = vmatpush.bf16.msra.mxu1 %v320_v29  ;;  %v181_v40 = vperm.slane %v120_v34, 0 }
  0x9f   :  { %v74_v44 = vadd.f32 %v73_v42, %v72_v38  ;;  %v90_v45 = vrot.slane %v89_v43, 4  ;;  %v1276_v42 = vperm.slane %v120_v34, 3 }
  0xa1   :  { %v75_v46 = vrot.slane %v74_v44, 2  ;;  %v91_v47 = vadd.f32 %v90_v45, %v89_v43  ;;  %v1280_v45 = vperm.slane %v120_v34, 1 }
  0xa3   :  { %v76_v48 = vadd.f32 %v75_v46, %v74_v44  ;;  %v92_v49 = vrot.slane %v91_v47, 2  ;;  %v1278_v44 = vperm.slane %v120_v34, 4 }
  0xa5   :  { %v77_v50 = vrot.slane %v76_v48, 1  ;;  %v93_v51 = vadd.f32 %v92_v49, %v91_v47  ;;  %v183_v49 = vmul.f32 %v181_v40, %v169_v17 }
  0xa7   :  { %v78_v52 = vadd.f32 %v77_v50, %v76_v48  ;;  %v94_v53 = vrot.slane %v93_v51, 1  ;;  %v1286_v48 = vperm.slane %v120_v34, 2  ;;  %v258_v50 = vmul.f32 %v1276_v42, %v243_v18 }
  0xa9   :  { %v95_v54 = vadd.f32 %v94_v53, %v93_v51  ;;  %v96_v55 = vmul.f32 0.03125, %v78_v52 }
  0xab   :  { %v97_v56 = vmul.f32 0.03125, %v95_v54  ;;  %v98_v57 = vmul.f32 %v96_v55, %v96_v55  ;;  %v104_v3 = vsub.f32 %v64_v33, %v96_v55  ;;  %v103_v4 = vsub.f32 %v1218_v19, %v96_v55 }
  0xac   :  { %v101_v5 = vsub.f32 %v1214_v15, %v96_v55  ;;  %v102_v12 = vsub.f32 %v1220_v20, %v96_v55  ;;  %v164_v15 = vpop.permute.xlu1 %163  ;;  %v281_v20 = vpop.permute.xlu2 %280  ;;  %v1265_v33 = vshrl.u32 %v154_v30, 7 }
  0xad   :  { %v99_v58 = vsub.f32 %v97_v56, %v98_v57  ;;  %v182_v47 = vmul.f32 %v181_v40, %v164_v15  ;;  %v296_v54 = vmul.f32 %v1278_v44, %v281_v20 }
  0xae   :  { %vm156_vm4 = vcmp.lt.s32.totalorder %v1265_v33, 2  ;;  %vm198_vm5 = vcmp.lt.s32.totalorder %v1265_v33, 1  ;;  %vm274_vm6 = vcmp.lt.s32.totalorder %v1265_v33, 6  ;;  %vm236_vm7 = vcmp.lt.s32.totalorder %v1265_v33, 7 }
  0xaf   :  { %v100_v59 = vmax.f32 %v99_v58, 0.0 }
  0xb1   :  { %v105_v60 = vadd.f32 1e-05, %v100_v59 }
  0xb3   :  { %1085 = vrsqrt.f32 %v105_v60  ;;  %vm112_vm2 = vweird.f32 %v105_v60 }
  0xb9   :  { %v1086_v61 = vpop.eup %1085 }
  0xba   :  { %v107_v62 = vmul.f32 %v1086_v61, %v105_v60  ;;  %vm113_vm1 = vweird.f32 %v1086_v61  ;;  %v220_v60 = vmul.f32 %v1280_v45, %v205_v26 }
  0xbb   :  { %vm114_vm3 = vmor %vm112_vm2, %vm113_vm1 }
  0xbc   :  { %v108_v63 = vmul.f32 %v1086_v61, %v107_v62 }
  0xbe   :  { %v109_v0 = vmul.f32 0.5, %v108_v63 }
  0xc0   :  { %v110_v1 = vsub.f32 1.5, %v109_v0 }
  0xc2   :  { %v111_v2 = vmul.f32 %v1086_v61, %v110_v1 }
  0xc4   :  { %v115_v6 = vsel %vm114_vm3, %v1086_v61, %v111_v2 }
  0xc5   :  { %v119_v7 = vmul.f32 %v115_v6, %v104_v3  ;;  %v1247_v8 = vmul.f32 %v115_v6, %v103_v4  ;;  %v116_v10 = vmul.f32 %v115_v6, %v101_v5  ;;  %v1251_v16 = vmul.f32 %v115_v6, %v102_v12 }
  0xc7   :  { %135 = vrot.lane.b32.xlu1 %v119_v7, %s1170_s0  ;;  %133 = vrot.lane.b32.xlu2 %v1247_v8, %s1170_s0 }
  0xc8   :  { %129 = vrot.lane.b32.xlu0 %v116_v10, %s1170_s0 }
  0xcf   :  { %212 = vperm.xlu1 %1059, %v123_v41   ;;  %178 = vperm.xlu2 %1058, %v124_v11  }
  0xd0   :  { %131 = vrot.lane.b32.xlu0 %v1251_v16, %s1170_s0 }
  0xd7   :  { %1062 = vset.pattern.permute.xlu1 %v1168_v25  ;;  %1060 = vset.pattern.permute.xlu2 %v1167_v13 }
  0xd8   :  { %284 = vperm.xlu0 %1056, %v1209_v14   ;;  %254 = vperm.xlu1 %1062, %v124_v11   ;;  %v209_v14 = vpop.permute.xlu1 %208 }
  0xd9   :  { %216 = vperm.xlu2 %1060, %v124_v11   ;;  %v221_v58 = vmul.f32 %v1280_v45, %v209_v14 }
  0xe0   :  { %1061 = vset.pattern.permute.xlu0 %v1168_v25  ;;  %1064 = vset.pattern.permute.xlu1 %v1169_v31  ;;  %v247_v19 = vpop.permute.xlu1 %246 }
  0xe1   :  { %1063 = vset.pattern.permute.xlu2 %v1169_v31  ;;  %250 = vperm.xlu0 %1061, %v123_v41   ;;  %v259_v59 = vmul.f32 %v1276_v42, %v247_v19 }
  0xe2   :  { %292 = vperm.xlu1 %1064, %v124_v11   ;;  %288 = vperm.xlu2 %1063, %v123_v41  }
  0xe8   :  { %v1263_v21 = vpop.permute.xlu1 %173 }
  0xe9   :  { %1067 = vset.pattern.permute.xlu0 %v1167_v13  ;;  %v184_v26 = vmul.f32 %v181_v40, %v1263_v21 }
  0xea   :  { %1066 = vset.pattern.permute.xlu2 %v1166_v9  ;;  %1065 = vset.pattern.permute.xlu1 %v1166_v9 }
 0x121   :  { %v134_v32 = vpop.permute.xlu2 %133 }
 0x122   :  { %v1294_v55 = vsel %vm40_vm0, %v1247_v8, %v134_v32 }
 0x123   :  { %v234_v2 = vrot.slane %v1294_v55, 1  ;;  %v152_v15 = vrot.slane %v1294_v55, 6  ;;  %v272_v27 = vrot.slane %v1294_v55, 2 }
 0x129   :  { %v179_v43 = vpop.permute.xlu2 %178 }
 0x12a   :  { %v185_v24 = vmul.f32 %v181_v40, %v179_v43 }
 0x139   :  { %v136_v35 = vpop.permute.xlu1 %135 }
 0x13a   :  { %v1268_v36 = vsel %vm40_vm0, %v119_v7, %v136_v35  ;;  %v130_v37 = vpop.permute.xlu0 %129 }
 0x13b   :  { %v153_v38 = vrot.slane %v1268_v36, 6  ;;  %v1272_v39 = vsel %vm40_vm0, %v116_v10, %v130_v37  ;;  %v197_v51 = vrot.slane %v1268_v36, 7  ;;  %v217_v10 = vpop.permute.xlu2 %216 }
 0x13c   :  { %v150_v41 = vrot.slane %v1272_v39, 6  ;;  %v194_v52 = vrot.slane %v1272_v39, 7  ;;  %v146_v62 = vmul.f32 %v1286_v48, %v1272_v39  ;;  %v232_v8 = vrot.slane %v1272_v39, 1 }
 0x13d   :  { %v157_v21 = vsel %vm156_vm4, %v152_v15, %v153_v38 }
 0x13e   :  { %v160_v46 = vsel %vm156_vm4, %v153_v38, %v150_v41  ;;  %v202_v3 = vsel %vm198_vm5, %v197_v51, %v194_v52 }
 0x13f   :  { %v186_v56 = vmul.f32 %v182_v47, %v160_v46  ;;  %v224_v17 = vmul.f32 %v220_v60, %v202_v3  ;;  %v1077_v47 = vld [vmem:[#allocation2 + $0x20] ss:$0 sm:$0xff]  ;;  %v149_v60 = vmul.f32 %v1286_v48, %v1268_v36 }
 0x141   :  { %v213_v53 = vpop.permute.xlu1 %212  ;;  %v190_v5 = vadd.f32 %v186_v56, %v146_v62  ;;  %v196_v56 = vrot.slane %v1294_v55, 7 }
 0x142   :  { %v132_v57 = vpop.permute.xlu0 %131  ;;  %v222_v38 = vmul.f32 %v1280_v45, %v213_v53 }
 0x143   :  { %v142_v61 = vsel %vm40_vm0, %v1251_v16, %v132_v57  ;;  %v270_v16 = vrot.slane %v1272_v39, 2  ;;  %v228_v30 = vadd.f32 %v224_v17, %v190_v5 }
 0x144   :  { %v151_v63 = vrot.slane %v142_v61, 6  ;;  %v233_v0 = vrot.slane %v142_v61, 1  ;;  %v195_v1 = vrot.slane %v142_v61, 7  ;;  %v271_v4 = vrot.slane %v142_v61, 2 }
 0x145   :  { %v147_v11 = vmul.f32 %v1286_v48, %v142_v61  ;;  %v289_v61 = vpop.permute.xlu2 %288 }
 0x146   :  { %v159_v6 = vsel %vm156_vm4, %v150_v41, %v151_v63  ;;  %v201_v7 = vsel %vm198_vm5, %v194_v52, %v195_v1  ;;  %v238_v14 = vsel %vm236_vm7, %v233_v0, %v234_v2  ;;  %v239_v18 = vsel %vm236_vm7, %v232_v8, %v233_v0 }
 0x147   :  { %v187_v12 = vmul.f32 %v183_v49, %v159_v6  ;;  %v225_v20 = vmul.f32 %v221_v58, %v201_v7  ;;  %v262_v22 = vmul.f32 %v258_v50, %v239_v18  ;;  %v277_v23 = vsel %vm274_vm6, %v270_v16, %v271_v4 }
 0x148   :  { %v158_v32 = vsel %vm156_vm4, %v151_v63, %v152_v15  ;;  %v263_v35 = vmul.f32 %v259_v59, %v238_v14  ;;  %v276_v39 = vsel %vm274_vm6, %v271_v4, %v272_v27  ;;  %v300_v41 = vmul.f32 %v296_v54, %v277_v23 }
 0x149   :  { %v191_v19 = vadd.f32 %v187_v12, %v147_v11  ;;  %v266_v40 = vadd.f32 %v262_v22, %v228_v30  ;;  %v188_v49 = vmul.f32 %v184_v26, %v158_v32  ;;  %v148_v52 = vmul.f32 %v1286_v48, %v1294_v55 }
 0x14a   :  { %v285_v28 = vpop.permute.xlu0 %284  ;;  %v255_v29 = vpop.permute.xlu1 %254  ;;  %v189_v58 = vmul.f32 %v185_v24, %v157_v21  ;;  %v223_v59 = vmul.f32 %v1280_v45, %v217_v10  ;;  %v235_v54 = vrot.slane %v1268_v36, 1  ;;  %v200_v62 = vsel %vm198_vm5, %v195_v1, %v196_v56 }
 0x14b   :  { %v229_v34 = vadd.f32 %v225_v20, %v191_v19  ;;  %v297_v37 = vmul.f32 %v1278_v44, %v285_v28  ;;  %v304_v50 = vadd.f32 %v300_v41, %v266_v40  ;;  %v261_v63 = vmul.f32 %v1276_v42, %v255_v29 }
 0x14c   :  { %v273_v4 = vrot.slane %v1268_v36, 2  ;;  %v192_v5 = vadd.f32 %v188_v49, %v148_v52  ;;  %v199_v48 = vsel %vm198_vm5, %v196_v56, %v197_v51  ;;  %v193_v45 = vadd.f32 %v189_v58, %v149_v60 }
 0x14d   :  { %v267_v43 = vadd.f32 %v263_v35, %v229_v34  ;;  %v301_v46 = vmul.f32 %v297_v37, %v276_v39  ;;  %v310_v0 = vadd.f32 %v1077_v47, %v304_v50  ;;  %v298_v7 = vmul.f32 %v1278_v44, %v289_v61 }
 0x14e   :  { %v226_v10 = vmul.f32 %v222_v38, %v200_v62  ;;  %v240_v1 = vsel %vm236_vm7, %v235_v54, %v232_v8  ;;  %v227_v15 = vmul.f32 %v223_v59, %v199_v48  ;;  %v237_v36 = vsel %vm236_vm7, %v234_v2, %v235_v54 }
 0x14f   :  { %v305_v57 = vadd.f32 %v301_v46, %v267_v43  ;;  %v265_v17 = vmul.f32 %v261_v63, %v240_v1  ;;  %v275_v14 = vsel %vm274_vm6, %v272_v27, %v273_v4  ;;  %v1078_v27 = vld [vmem:[#allocation2 + $0x68] ss:$0 sm:$0xff] }
 0x150   :  { %v230_v18 = vadd.f32 %v226_v10, %v192_v5  ;;  %v231_v8 = vadd.f32 %v227_v15, %v193_v45  ;;  %v302_v23 = vmul.f32 %v298_v7, %v275_v14 }
 0x151   :  { %v311_v3 = vadd.f32 %v1077_v47, %v305_v57 }
 0x152   :  { %v269_v55 = vadd.f32 %v265_v17, %v231_v8 }
 0x153   :  { %v251_v53 = vpop.permute.xlu0 %250  ;;  %v318_v6 = vpack.c.bf16 %v311_v3, %v310_v0 }
 0x154   :  { %v260_v11 = vmul.f32 %v1276_v42, %v251_v53  ;;  %v293_v12 = vpop.permute.xlu1 %292  ;;  %v278_v42 = vsel %vm274_vm6, %v273_v4, %v270_v16 }
 0x155   :  { %v299_v51 = vmul.f32 %v1278_v44, %v293_v12  ;;  %1024 = vmatmul.msk.bf16.vlgmr.msra.gmra.mxu1 %vm324_vm8, %v318_v6 }
 0x156   :  { %v264_v19 = vmul.f32 %v260_v11, %v237_v36 }
 0x157   :  { %v303_v20 = vmul.f32 %v299_v51, %v278_v42 }
 0x158   :  { %v268_v22 = vadd.f32 %v264_v19, %v230_v18 }
 0x159   :  { %v307_v26 = vadd.f32 %v303_v20, %v269_v55 }
 0x15a   :  { %v306_v24 = vadd.f32 %v302_v23, %v268_v22 }
 0x15b   :  { %v313_v28 = vadd.f32 %v1077_v47, %v307_v26 }
 0x15c   :  { %v312_v2 = vadd.f32 %v1077_v47, %v306_v24 }
 0x15e   :  { %v319_v44 = vpack.c.bf16 %v313_v28, %v312_v2 }
 0x165   :  { %1025 = vmatmul.msk.bf16.gmra.mxu1 %vm324_vm8, %v319_v44 }
 0x1d2   :  { %v340_v29 = vpop.f32.mrf.mxu1 }
 0x1d3   :  { %v341_v35 = vadd.f32 %v1078_v27, %v340_v29 }
 0x1d5   :  { %v363_v39 = vmul.f32 %v341_v35, %v341_v35  ;;  %v350_v41 = vsel %vm40_vm0, %v341_v35, 0.0 }
 0x1d7   :  { %v367_v50 = vsel %vm40_vm0, %v363_v39, 0.0 }
 0x1da   :  { %v342_v30 = vpop.f32.mrf.mxu1 }
 0x1db   :  { %v343_v32 = vadd.f32 %v1078_v27, %v342_v30 }
 0x1dd   :  { %v364_v16 = vmul.f32 %v343_v32, %v343_v32  ;;  %v351_v21 = vsel %vm40_vm0, %v343_v32, 0.0 }
 0x1de   :  { %v352_v47 = vadd.f32 %v351_v21, %v350_v41 }
 0x1df   :  { %v368_v43 = vsel %vm40_vm0, %v364_v16, 0.0 }
 0x1e0   :  { %v369_v57 = vadd.f32 %v368_v43, %v367_v50 }
 0x1e2   :  { %v345_v34 = vpop.f32.mrf.mxu1 }
 0x1e3   :  { %v346_v37 = vadd.f32 %v1078_v27, %v345_v34 }
 0x1e5   :  { %v365_v40 = vmul.f32 %v346_v37, %v346_v37  ;;  %v353_v46 = vsel %vm40_vm0, %v346_v37, 0.0 }
 0x1e6   :  { %v354_v58 = vadd.f32 %v353_v46, %v352_v47 }
 0x1e7   :  { %v370_v52 = vsel %vm40_vm0, %v365_v40, 0.0 }
 0x1e8   :  { %v371_v38 = vadd.f32 %v370_v52, %v369_v57 }
 0x1ea   :  { %v347_v49 = vpop.f32.mrf.mxu1 }
 0x1eb   :  { %v348_v56 = vadd.f32 %v1078_v27, %v347_v49 }
 0x1ed   :  { %v355_v59 = vsel %vm40_vm0, %v348_v56, 0.0  ;;  %v366_v60 = vmul.f32 %v348_v56, %v348_v56 }
 0x1ee   :  { %v356_v54 = vadd.f32 %v355_v59, %v354_v58 }
 0x1ef   :  { %v372_v61 = vsel %vm40_vm0, %v366_v60, 0.0 }
 0x1f0   :  { %v357_v62 = vrot.slane %v356_v54, 4  ;;  %v373_v63 = vadd.f32 %v372_v61, %v371_v38 }
 0x1f2   :  { %v358_v0 = vadd.f32 %v357_v62, %v356_v54  ;;  %v374_v3 = vrot.slane %v373_v63, 4 }
 0x1f4   :  { %v359_v4 = vrot.slane %v358_v0, 2  ;;  %v375_v5 = vadd.f32 %v374_v3, %v373_v63 }
 0x1f6   :  { %v360_v48 = vadd.f32 %v359_v4, %v358_v0  ;;  %v376_v45 = vrot.slane %v375_v5, 2 }
 0x1f8   :  { %v361_v53 = vrot.slane %v360_v48, 1  ;;  %v377_v6 = vadd.f32 %v376_v45, %v375_v5 }
 0x1fa   :  { %v362_v7 = vadd.f32 %v361_v53, %v360_v48  ;;  %v378_v10 = vrot.slane %v377_v6, 1 }
 0x1fc   :  { %v379_v1 = vadd.f32 %v378_v10, %v377_v6  ;;  %v380_v11 = vmul.f32 0.03125, %v362_v7  ;;  %v440_v10 = vld [vmem:[#allocation2 + $0x70] sm:$0xff] }
 0x1fe   :  { %v381_v12 = vmul.f32 0.03125, %v379_v1  ;;  %v382_v15 = vmul.f32 %v380_v11, %v380_v11  ;;  %v385_v22 = vsub.f32 %v341_v35, %v380_v11  ;;  %v386_v23 = vsub.f32 %v343_v32, %v380_v11  ;;  %v441_v1 = vld [vmem:[#allocation2 + $0x78] sm:$0xff] }
 0x1ff   :  { %v387_v55 = vsub.f32 %v346_v37, %v380_v11  ;;  %v388_v24 = vsub.f32 %v348_v56, %v380_v11  ;;  %v442_v11 = vld [vmem:[#allocation2 + $0x80] sm:$0xff] }
 0x200   :  { %v383_v17 = vsub.f32 %v381_v12, %v382_v15  ;;  %v443_v12 = vld [vmem:[#allocation2 + $0x88] sm:$0xff]  ;;  %v489_v15 = vld [vmem:[#allocation2 + $0xa0] sm:$0xff] }
 0x202   :  { %v384_v36 = vmax.f32 %v383_v17, 0.0  ;;  %v490_v17 = vld [vmem:[#allocation2 + $0xa8] sm:$0xff] }
 0x204   :  { %v389_v51 = vadd.f32 1e-05, %v384_v36  ;;  %v492_v36 = vpack.c.bf16 %v490_v17, %v489_v15  ;;  %v675_v15 = vld [vmem:[#allocation2 + $0x108] sm:$0xff]  ;;  %v676_v17 = vld [vmem:[#allocation2 + $0x110] sm:$0xff] }
 0x206   :  { %1087 = vrsqrt.f32 %v389_v51  ;;  %vm396_vm10 = vweird.f32 %v389_v51  ;;  %503 = vmatpush.bf16.msrb.mxu3 %v492_v36  ;;  %v681_v36 = vpack.c.bf16 %v676_v17, %v675_v15 }
 0x208   :  { %692 = vmatpush.bf16.msrb.mxu0 %v681_v36 }
 0x20c   :  { %v1088_v14 = vpop.eup %1087 }
 0x20d   :  { %v391_v18 = vmul.f32 %v1088_v14, %v389_v51  ;;  %vm397_vm9 = vweird.f32 %v1088_v14  ;;  %v485_v51 = vld [vmem:[#allocation2 + $0x90] sm:$0xff] }
 0x20e   :  { %vm398_vm11 = vmor %vm396_vm10, %vm397_vm9 }
 0x20f   :  { %v392_v19 = vmul.f32 %v1088_v14, %v391_v18 }
 0x211   :  { %v393_v42 = vmul.f32 0.5, %v392_v19 }
 0x213   :  { %v394_v8 = vsub.f32 1.5, %v393_v42 }
 0x215   :  { %v395_v20 = vmul.f32 %v1088_v14, %v394_v8 }
 0x217   :  { %v399_v26 = vsel %vm398_vm11, %v1088_v14, %v395_v20  ;;  %v486_v14 = vld [vmem:[#allocation2 + $0x98] sm:$0xff] }
 0x218   :  { %v400_v2 = vmul.f32 %v399_v26, %v385_v22  ;;  %v401_v28 = vmul.f32 %v399_v26, %v386_v23  ;;  %v402_v44 = vmul.f32 %v399_v26, %v387_v55  ;;  %v403_v29 = vmul.f32 %v399_v26, %v388_v24  ;;  %v1383_v26 = vld [vmem:[#allocation2 + $0xd0] sm:$0xff] }
 0x219   :  { %v488_v18 = vpack.c.bf16 %v486_v14, %v485_v51  ;;  %598 = vperm.xlu2 %1066, %v1383_v26   ;;  %v673_v14 = vld [vmem:[#allocation2 + $0xf8] sm:$0xff] }
 0x21a   :  { %v411_v30 = vmul.f32 0.044715, %v403_v29  ;;  %v410_v27 = vmul.f32 0.044715, %v402_v44  ;;  %v409_v34 = vmul.f32 0.044715, %v401_v28 }
 0x21b   :  { %v408_v16 = vmul.f32 0.044715, %v400_v2  ;;  %v407_v38 = vmul.f32 0.5, %v403_v29  ;;  %v406_v3 = vmul.f32 0.5, %v402_v44  ;;  %v405_v48 = vmul.f32 0.5, %v401_v28  ;;  %520 = vmatpush.bf16.msra.mxu3 %v488_v18  ;;  %v674_v18 = vld [vmem:[#allocation2 + $0x100] sm:$0xff] }
 0x21c   :  { %v415_v39 = vmul.f32 %v411_v30, %v403_v29  ;;  %v414_v21 = vmul.f32 %v410_v27, %v402_v44  ;;  %v413_v40 = vmul.f32 %v409_v34, %v401_v28  ;;  %v404_v6 = vmul.f32 0.5, %v400_v2 }
 0x21d   :  { %v412_v41 = vmul.f32 %v408_v16, %v400_v2 }
 0x21e   :  { %v419_v43 = vmul.f32 %v415_v39, %v403_v29  ;;  %v418_v46 = vmul.f32 %v414_v21, %v402_v44  ;;  %v417_v35 = vmul.f32 %v413_v40, %v401_v28 }
 0x21f   :  { %v416_v32 = vmul.f32 %v412_v41, %v400_v2 }
 0x220   :  { %v423_v37 = vadd.f32 %v419_v43, %v403_v29  ;;  %v422_v47 = vadd.f32 %v418_v46, %v402_v44  ;;  %v421_v49 = vadd.f32 %v417_v35, %v401_v28  ;;  %v1079_v29 = vld [vmem:[#allocation2 + $0xb0] ss:$0 sm:$0xff] }
 0x221   :  { %v420_v50 = vadd.f32 %v416_v32, %v400_v2  ;;  %v1385_v2 = vld [vmem:[#allocation2 + $0xc8] sm:$0xff]  ;;  %1069 = vset.pattern.permute.xlu2 %v1168_v25 }
 0x222   :  { %v427_v52 = vmul.f32 0.7978846, %v423_v37  ;;  %v426_v56 = vmul.f32 0.7978846, %v422_v47  ;;  %v425_v57 = vmul.f32 0.7978846, %v421_v49  ;;  %593 = vperm.xlu1 %1065, %v1385_v2   ;;  %613 = vperm.xlu0 %1067, %v1385_v2  }
 0x223   :  { %v424_v58 = vmul.f32 0.7978846, %v420_v50  ;;  %632 = vperm.xlu2 %1069, %v1385_v2  }
 0x224   :  { %1089 = vtanh.f32 %v427_v52 }
 0x225   :  { %1091 = vtanh.f32 %v426_v56 }
 0x226   :  { %1093 = vtanh.f32 %v425_v57 }
 0x227   :  { %1095 = vtanh.f32 %v424_v58 }
 0x22a   :  { %v1090_v59 = vpop.eup %1089  ;;  %1068 = vset.pattern.permute.xlu1 %v1167_v13  ;;  %1072 = vset.pattern.permute.xlu0 %v1169_v31 }
 0x22b   :  { %v1092_v60 = vpop.eup %1091  ;;  %v435_v54 = vadd.f32 1.0, %v1090_v59  ;;  %617 = vperm.xlu1 %1068, %v1383_v26   ;;  %1071 = vset.pattern.permute.xlu2 %v1169_v31 }
 0x22c   :  { %v1094_v61 = vpop.eup %1093  ;;  %v434_v62 = vadd.f32 1.0, %v1092_v60 }
 0x22d   :  { %v1096_v63 = vpop.eup %1095  ;;  %v439_v0 = vmul.f32 %v435_v54, %v407_v38  ;;  %v433_v4 = vadd.f32 1.0, %v1094_v61 }
 0x22e   :  { %v438_v5 = vmul.f32 %v434_v62, %v406_v3  ;;  %v432_v45 = vadd.f32 1.0, %v1096_v63 }
 0x22f   :  { %468 = vmatpush.msra.mxu2 %v439_v0  ;;  %v437_v53 = vmul.f32 %v433_v4, %v405_v48 }
 0x230   :  { %v436_v7 = vmul.f32 %v432_v45, %v404_v6 }
 0x231   :  { %469 = vmatpush.msra.mxu2 %v438_v5 }
 0x233   :  { %470 = vmatpush.msra.mxu2 %v437_v53  ;;  %1070 = vset.pattern.permute.xlu1 %v1168_v25 }
 0x234   :  { %636 = vperm.xlu1 %1070, %v1383_v26  }
 0x235   :  { %471 = vmatpush.msra.mxu2 %v436_v7 }
 0x236   :  { %1026 = vmatmul.msk.f32.vlgmr.msra.gmra.mxu2 %vm324_vm8, %v440_v10 }
 0x23c   :  { %1074 = vset.pattern.permute.xlu1 %v1167_v13 }
 0x23e   :  { %1027 = vmatmul.msk.f32.gmra.mxu2 %vm324_vm8, %v441_v1 }
 0x246   :  { %1028 = vmatmul.msk.f32.gmra.mxu2 %vm324_vm8, %v442_v11 }
 0x24e   :  { %1029 = vmatmul.msk.f32.gmra.mxu2 %vm324_vm8, %v443_v12  ;;  %v1405_v12 = vld [vmem:[#allocation2 + $0x188] sm:$0xff] }
 0x273   :  { %v599_v51 = vpop.permute.xlu2 %598 }
 0x2b9   :  { %v473_v19 = vpop.f32.mrf.mxu2 }
 0x2c1   :  { %v476_v42 = vpop.f32.mrf.mxu2 }
 0x2c2   :  { %v487_v23 = vpack.c.bf16 %v476_v42, %v473_v19  ;;  %v680_v19 = vpack.c.bf16 %v674_v18, %v673_v14  ;;  %v594_v42 = vpop.permute.xlu1 %593  ;;  %v1080_v18 = vld [vmem:[#allocation2 + $0xc0] ss:$0 sm:$0xff] }
 0x2c4   :  { %693 = vmatpush.bf16.msrb.mxu0 %v680_v19 }
 0x2c9   :  { %v479_v8 = vpop.f32.mrf.mxu2 }
 0x2d1   :  { %v482_v20 = vpop.f32.mrf.mxu2 }
 0x2d2   :  { %v491_v22 = vpack.c.bf16 %v482_v20, %v479_v8  ;;  %v671_v8 = vld [vmem:[#allocation2 + $0xe8] sm:$0xff]  ;;  %v672_v20 = vld [vmem:[#allocation2 + $0xf0] sm:$0xff] }
 0x2d4   :  { %1030 = vmatmul.msk.bf16.vlgmr.msrb.gmra.mxu3 %vm40_vm0, %v491_v22  ;;  %v679_v22 = vpack.c.bf16 %v672_v20, %v671_v8 }
 0x2d6   :  { %694 = vmatpush.bf16.msrb.mxu0 %v679_v22 }
 0x2e4   :  { %1031 = vmatmul.msk.bf16.vlgmr.msra.gmra.mxu3 %vm40_vm0, %v487_v23  ;;  %v670_v23 = vld [vmem:[#allocation2 + $0xe0] sm:$0xff] }
 0x357   :  { %v505_v55 = vpop.f32.mrf.mxu3 }
 0x35f   :  { %v507_v24 = vpop.f32.mrf.mxu3 }
 0x367   :  { %v522_v28 = vpop.f32.mrf.mxu3 }
 0x368   :  { %v523_v44 = vadd.f32 %v522_v28, %v505_v55  ;;  %v633_v55 = vpop.permute.xlu2 %632 }
 0x36a   :  { %v529_v30 = vadd.f32 %v1079_v29, %v523_v44 }
 0x36c   :  { %v540_v16 = vmul.f32 %v529_v30, %v529_v30  ;;  %v531_v21 = vsel %vm324_vm8, %v529_v30, 0.0 }
 0x36e   :  { %v542_v46 = vsel %vm324_vm8, %v540_v16, 0.0 }
 0x36f   :  { %v524_v27 = vpop.f32.mrf.mxu3 }
 0x370   :  { %v525_v34 = vadd.f32 %v524_v27, %v507_v24  ;;  %v614_v24 = vpop.permute.xlu0 %613 }
 0x372   :  { %v530_v39 = vadd.f32 %v1079_v29, %v525_v34 }
 0x374   :  { %v532_v40 = vsel %vm324_vm8, %v530_v39, 0.0  ;;  %v541_v41 = vmul.f32 %v530_v39, %v530_v39 }
 0x375   :  { %v533_v43 = vadd.f32 %v532_v40, %v531_v21 }
 0x376   :  { %v543_v35 = vsel %vm324_vm8, %v541_v41, 0.0 }
 0x377   :  { %v534_v32 = vrot.slane %v533_v43, 4  ;;  %v544_v37 = vadd.f32 %v543_v35, %v542_v46 }
 0x379   :  { %v535_v47 = vadd.f32 %v534_v32, %v533_v43  ;;  %v545_v49 = vrot.slane %v544_v37, 4 }
 0x37b   :  { %v536_v50 = vrot.slane %v535_v47, 2  ;;  %v546_v52 = vadd.f32 %v545_v49, %v544_v37 }
 0x37d   :  { %v537_v56 = vadd.f32 %v536_v50, %v535_v47  ;;  %v547_v57 = vrot.slane %v546_v52, 2 }
 0x37f   :  { %v548_v58 = vadd.f32 %v547_v57, %v546_v52  ;;  %v538_v59 = vrot.slane %v537_v56, 1 }
 0x381   :  { %v549_v60 = vrot.slane %v548_v58, 1  ;;  %v539_v31 = vadd.f32 %v538_v59, %v537_v56 }
 0x383   :  { %v550_v38 = vadd.f32 %v549_v60, %v548_v58  ;;  %v551_v54 = vmul.f32 0.0625, %v539_v31 }
 0x385   :  { %v552_v61 = vmul.f32 0.0625, %v550_v38  ;;  %v553_v62 = vmul.f32 %v551_v54, %v551_v54  ;;  %v557_v13 = vsub.f32 %v530_v39, %v551_v54  ;;  %v556_v7 = vsub.f32 %v529_v30, %v551_v54 }
 0x387   :  { %v554_v63 = vsub.f32 %v552_v61, %v553_v62 }
 0x389   :  { %v555_v0 = vmax.f32 %v554_v63, 0.0 }
 0x38b   :  { %v558_v3 = vadd.f32 1e-05, %v555_v0 }
 0x38d   :  { %1097 = vrsqrt.f32 %v558_v3  ;;  %vm565_vm13 = vweird.f32 %v558_v3 }
 0x393   :  { %v1098_v4 = vpop.eup %1097 }
 0x394   :  { %v560_v5 = vmul.f32 %v1098_v4, %v558_v3  ;;  %vm566_vm12 = vweird.f32 %v1098_v4 }
 0x395   :  { %vm567_vm14 = vmor %vm565_vm13, %vm566_vm12 }
 0x396   :  { %v561_v48 = vmul.f32 %v1098_v4, %v560_v5 }
 0x398   :  { %v562_v45 = vmul.f32 0.5, %v561_v48 }
 0x39a   :  { %v563_v53 = vsub.f32 1.5, %v562_v45 }
 0x39c   :  { %v564_v6 = vmul.f32 %v1098_v4, %v563_v53 }
 0x39e   :  { %v568_v10 = vsel %vm567_vm14, %v1098_v4, %v564_v6 }
 0x39f   :  { %v570_v1 = vmul.f32 %v568_v10, %v557_v13  ;;  %v569_v11 = vmul.f32 %v568_v10, %v556_v7 }
 0x3a1   :  { %578 = vrot.lane.b32.xlu0 %v570_v1, %s1171_s23  ;;  %576 = vrot.lane.b32.xlu2 %v569_v11, %s1171_s23 }
 0x3a9   :  { %655 = vperm.xlu0 %1072, %v1383_v26   ;;  %651 = vperm.xlu2 %1071, %v1385_v2   ;;  %v618_v26 = vpop.permute.xlu1 %617  ;;  %v571_v2 = vld [vmem:[#allocation2 + $0xb8] sm:$0x1f] }
 0x3aa   :  { %v601_v44 = vperm.slane %v571_v2, 0  ;;  %v639_v29 = vperm.slane %v571_v2, 3  ;;  %v620_v30 = vperm.slane %v571_v2, 1  ;;  %v584_v34 = vperm.slane %v571_v2, 2 }
 0x3ab   :  { %v658_v32 = vperm.slane %v571_v2, 4 }
 0x3ac   :  { %v603_v16 = vmul.f32 %v601_v44, %v599_v51  ;;  %v640_v39 = vmul.f32 %v639_v29, %v633_v55  ;;  %v602_v21 = vmul.f32 %v601_v44, %v594_v42  ;;  %v621_v46 = vmul.f32 %v620_v30, %v614_v24  ;;  %v1081_v24 = vld [vmem:[#allocation2 + $0x118] ss:$0 sm:$0xff] }
 0x3ad   :  { %v622_v56 = vmul.f32 %v620_v30, %v618_v26 }
 0x3b1   :  { %912 = vperm.xlu0 %1072, %v1405_v12   ;;  %1073 = vset.pattern.permute.xlu2 %v1166_v9  ;;  %v669_v9 = vld [vmem:[#allocation2 + $0xd8] sm:$0xff]  ;;  %v637_v41 = vpop.permute.xlu1 %636 }
 0x3b2   :  { %885 = vperm.xlu2 %1073, %v1405_v12   ;;  %v641_v58 = vmul.f32 %v639_v29, %v637_v41 }
 0x3ba   :  { %1075 = vset.pattern.permute.xlu2 %v1168_v25  ;;  %v678_v25 = vpack.c.bf16 %v670_v23, %v669_v9 }
 0x3bb   :  { %903 = vperm.xlu2 %1075, %v1405_v12  }
 0x3bc   :  { %695 = vmatpush.bf16.msrb.mxu0 %v678_v25 }
 0x3fb   :  { %v577_v28 = vpop.permute.xlu2 %576 }
 0x3fc   :  { %v582_v27 = vsel %vm324_vm8, %v569_v11, %v577_v28 }
 0x3fd   :  { %v587_v43 = vrot.slane %v582_v27, 6  ;;  %v608_v37 = vrot.slane %v582_v27, 7  ;;  %v585_v52 = vmul.f32 %v584_v34, %v582_v27  ;;  %v627_v57 = vrot.slane %v582_v27, 1 }
 0x3fe   :  { %v646_v3 = vrot.slane %v582_v27, 2 }
 0x403   :  { %v652_v59 = vpop.permute.xlu2 %651 }
 0x404   :  { %v659_v48 = vmul.f32 %v658_v32, %v652_v59 }
 0x413   :  { %v579_v40 = vpop.permute.xlu0 %578 }
 0x414   :  { %v583_v35 = vsel %vm324_vm8, %v570_v1, %v579_v40 }
 0x415   :  { %v588_v47 = vrot.slane %v583_v35, 6  ;;  %v609_v49 = vrot.slane %v583_v35, 7  ;;  %v628_v50 = vrot.slane %v583_v35, 1  ;;  %v647_v54 = vrot.slane %v583_v35, 2 }
 0x416   :  { %v586_v61 = vmul.f32 %v584_v34, %v583_v35 }
 0x417   :  { %v590_v60 = vsel %vm156_vm4, %v588_v47, %v587_v43  ;;  %v589_v31 = vsel %vm156_vm4, %v587_v43, %v588_v47  ;;  %v610_v38 = vsel %vm198_vm5, %v608_v37, %v609_v49  ;;  %v630_v63 = vsel %vm236_vm7, %v628_v50, %v627_v57 }
 0x418   :  { %v605_v62 = vmul.f32 %v603_v16, %v589_v31  ;;  %v604_v0 = vmul.f32 %v602_v21, %v590_v60  ;;  %v611_v4 = vsel %vm198_vm5, %v609_v49, %v608_v37  ;;  %v629_v5 = vsel %vm236_vm7, %v627_v57, %v628_v50 }
 0x419   :  { %v624_v53 = vmul.f32 %v622_v56, %v610_v38  ;;  %v623_v13 = vmul.f32 %v621_v46, %v611_v4  ;;  %v643_v7 = vmul.f32 %v641_v58, %v630_v63  ;;  %v648_v10 = vsel %vm274_vm6, %v646_v3, %v647_v54 }
 0x41a   :  { %v607_v45 = vadd.f32 %v605_v62, %v586_v61  ;;  %v606_v6 = vadd.f32 %v604_v0, %v585_v52  ;;  %v642_v17 = vmul.f32 %v640_v39, %v629_v5  ;;  %v649_v51 = vsel %vm274_vm6, %v647_v54, %v646_v3 }
 0x41b   :  { %v656_v1 = vpop.permute.xlu0 %655  ;;  %v661_v42 = vmul.f32 %v659_v48, %v648_v10  ;;  %v800_v10 = vld [vmem:[#allocation2 + $0x160] sm:$0xff] }
 0x41c   :  { %v626_v11 = vadd.f32 %v624_v53, %v607_v45  ;;  %v625_v15 = vadd.f32 %v623_v13, %v606_v6  ;;  %v660_v36 = vmul.f32 %v658_v32, %v656_v1  ;;  %v793_v13 = vld [vmem:[#allocation2 + $0x140] sm:$0xff] }
 0x41e   :  { %v645_v14 = vadd.f32 %v643_v7, %v626_v11  ;;  %v644_v19 = vadd.f32 %v642_v17, %v625_v15  ;;  %v662_v8 = vmul.f32 %v660_v36, %v649_v51  ;;  %v794_v7 = vld [vmem:[#allocation2 + $0x148] sm:$0xff] }
 0x41f   :  { %v797_v15 = vpack.c.bf16 %v794_v7, %v793_v13  ;;  %v801_v17 = vld [vmem:[#allocation2 + $0x168] sm:$0xff]  ;;  %v934_v13 = vld [vmem:[#allocation2 + $0x1f0] sm:$0xff] }
 0x420   :  { %v663_v20 = vadd.f32 %v661_v42, %v644_v19  ;;  %v664_v22 = vadd.f32 %v662_v8, %v645_v14  ;;  %v804_v36 = vpack.c.bf16 %v801_v17, %v800_v10  ;;  %v935_v10 = vld [vmem:[#allocation2 + $0x1f8] sm:$0xff]  ;;  %v933_v17 = vld [vmem:[#allocation2 + $0x1e8] sm:$0xff] }
 0x421   :  { %830 = vmatpush.bf16.msrb.mxu2 %v797_v15  ;;  %v932_v15 = vld [vmem:[#allocation2 + $0x1e0] sm:$0xff] }
 0x422   :  { %v667_v9 = vadd.f32 %v1080_v18, %v663_v20  ;;  %v668_v23 = vadd.f32 %v1080_v18, %v664_v22  ;;  %814 = vmatpush.bf16.msrb.mxu1 %v804_v36  ;;  %v944_v36 = vpack.c.bf16 %v933_v17, %v932_v15 }
 0x424   :  { %v677_v55 = vpack.c.bf16 %v668_v23, %v667_v9 }
 0x426   :  { %1032 = vmatmul.msk.bf16.vlgmr.msrb.gmra.mxu0 %vm684_vm15, %v677_v55 }
 0x4a3   :  { %v697_v25 = vpop.f32.mrf.mxu0 }
 0x4a4   :  { %v698_v26 = vadd.f32 %v1081_v24, %v697_v25 }
 0x4a6   :  { %v711_v28 = vmul.f32 %v698_v26, %v698_v26  ;;  %v702_v44 = vsel %vm324_vm8, %v698_v26, 0.0 }
 0x4a8   :  { %v713_v34 = vsel %vm324_vm8, %v711_v28, 0.0  ;;  %v761_v28 = vld [vmem:[#allocation2 + $0x128] sm:$0xff] }
 0x4ab   :  { %v699_v2 = vpop.f32.mrf.mxu0 }
 0x4ac   :  { %v700_v33 = vadd.f32 %v1081_v24, %v699_v2  ;;  %v760_v2 = vld [vmem:[#allocation2 + $0x120] sm:$0xff] }
 0x4ae   :  { %v703_v29 = vsel %vm324_vm8, %v700_v33, 0.0  ;;  %v712_v30 = vmul.f32 %v700_v33, %v700_v33 }
 0x4af   :  { %v704_v27 = vadd.f32 %v703_v29, %v702_v44  ;;  %v792_v44 = vld [vmem:[#allocation2 + $0x138] sm:$0xff] }
 0x4b0   :  { %v714_v16 = vsel %vm324_vm8, %v712_v30, 0.0  ;;  %v798_v30 = vld [vmem:[#allocation2 + $0x150] sm:$0xff] }
 0x4b1   :  { %v705_v39 = vrot.slane %v704_v27, 4  ;;  %v715_v21 = vadd.f32 %v714_v16, %v713_v34 }
 0x4b3   :  { %v706_v40 = vadd.f32 %v705_v39, %v704_v27  ;;  %v716_v41 = vrot.slane %v715_v21, 4  ;;  %v799_v27 = vld [vmem:[#allocation2 + $0x158] sm:$0xff] }
 0x4b4   :  { %v803_v34 = vpack.c.bf16 %v799_v27, %v798_v30  ;;  %v925_v30 = vld [vmem:[#allocation2 + $0x1a8] sm:$0xff]  ;;  %v922_v27 = vld [vmem:[#allocation2 + $0x190] sm:$0xff] }
 0x4b5   :  { %v707_v43 = vrot.slane %v706_v40, 2  ;;  %v717_v46 = vadd.f32 %v716_v41, %v715_v21 }
 0x4b6   :  { %815 = vmatpush.bf16.msrb.mxu1 %v803_v34 }
 0x4b7   :  { %v708_v35 = vadd.f32 %v707_v43, %v706_v40  ;;  %v718_v32 = vrot.slane %v717_v46, 2  ;;  %v1082_v43 = vld [vmem:[#allocation2 + $0x170] ss:$0 sm:$0xff] }
 0x4b9   :  { %v709_v37 = vrot.slane %v708_v35, 1  ;;  %v719_v47 = vadd.f32 %v718_v32, %v717_v46 }
 0x4bb   :  { %v710_v49 = vadd.f32 %v709_v37, %v708_v35  ;;  %v720_v50 = vrot.slane %v719_v47, 1 }
 0x4bd   :  { %v721_v52 = vadd.f32 %v720_v50, %v719_v47  ;;  %v722_v56 = vmul.f32 0.0625, %v710_v49 }
 0x4bf   :  { %v723_v57 = vmul.f32 0.0625, %v721_v52  ;;  %v724_v58 = vmul.f32 %v722_v56, %v722_v56  ;;  %v727_v3 = vsub.f32 %v698_v26, %v722_v56  ;;  %v728_v4 = vsub.f32 %v700_v33, %v722_v56  ;;  %v791_v33 = vld [vmem:[#allocation2 + $0x130] sm:$0xff] }
 0x4c0   :  { %v796_v29 = vpack.c.bf16 %v792_v44, %v791_v33  ;;  %v927_v33 = vld [vmem:[#allocation2 + $0x1b8] sm:$0xff] }
 0x4c1   :  { %v725_v59 = vsub.f32 %v723_v57, %v724_v58 }
 0x4c2   :  { %831 = vmatpush.bf16.msrb.mxu2 %v796_v29  ;;  %v924_v29 = vld [vmem:[#allocation2 + $0x1a0] sm:$0xff] }
 0x4c3   :  { %v726_v60 = vmax.f32 %v725_v59, 0.0  ;;  %v940_v34 = vpack.c.bf16 %v925_v30, %v924_v29 }
 0x4c5   :  { %v729_v31 = vadd.f32 1e-05, %v726_v60 }
 0x4c7   :  { %1099 = vrsqrt.f32 %v729_v31  ;;  %vm736_vm2 = vweird.f32 %v729_v31 }
 0x4cd   :  { %v1100_v38 = vpop.eup %1099 }
 0x4ce   :  { %v731_v54 = vmul.f32 %v1100_v38, %v729_v31  ;;  %vm737_vm1 = vweird.f32 %v1100_v38 }
 0x4cf   :  { %vm738_vm3 = vmor %vm736_vm2, %vm737_vm1 }
 0x4d0   :  { %v732_v61 = vmul.f32 %v1100_v38, %v731_v54 }
 0x4d2   :  { %v733_v62 = vmul.f32 0.5, %v732_v61 }
 0x4d4   :  { %v734_v63 = vsub.f32 1.5, %v733_v62 }
 0x4d6   :  { %v735_v0 = vmul.f32 %v1100_v38, %v734_v63 }
 0x4d8   :  { %v739_v5 = vsel %vm738_vm3, %v1100_v38, %v735_v0 }
 0x4d9   :  { %v740_v48 = vmul.f32 %v739_v5, %v727_v3  ;;  %v741_v45 = vmul.f32 %v739_v5, %v728_v4 }
 0x4db   :  { %v745_v53 = vmul.f32 0.044715, %v741_v45  ;;  %v744_v6 = vmul.f32 0.044715, %v740_v48  ;;  %v743_v9 = vmul.f32 0.5, %v741_v45  ;;  %v742_v24 = vmul.f32 0.5, %v740_v48 }
 0x4dd   :  { %v747_v1 = vmul.f32 %v745_v53, %v741_v45  ;;  %v746_v11 = vmul.f32 %v744_v6, %v740_v48  ;;  %v936_v53 = vld [vmem:[#allocation2 + $0x200] sm:$0xff]  ;;  %v937_v6 = vld [vmem:[#allocation2 + $0x208] sm:$0xff] }
 0x4de   :  { %v946_v7 = vpack.c.bf16 %v937_v6, %v936_v53 }
 0x4df   :  { %v749_v51 = vmul.f32 %v747_v1, %v741_v45  ;;  %v748_v14 = vmul.f32 %v746_v11, %v740_v48  ;;  %v945_v11 = vpack.c.bf16 %v935_v10, %v934_v13  ;;  %v1084_v13 = vld [vmem:[#allocation2 + $0x210] ss:$0 sm:$0xff] }
 0x4e0   :  { %949 = vmatpush.bf16.msra.mxu0 %v946_v7 }
 0x4e1   :  { %v751_v18 = vadd.f32 %v749_v51, %v741_v45  ;;  %v750_v19 = vadd.f32 %v748_v14, %v740_v48 }
 0x4e3   :  { %v753_v42 = vmul.f32 0.7978846, %v751_v18  ;;  %v752_v8 = vmul.f32 0.7978846, %v750_v19 }
 0x4e4   :  { %950 = vmatpush.bf16.msra.mxu0 %v945_v11 }
 0x4e5   :  { %1101 = vtanh.f32 %v753_v42 }
 0x4e6   :  { %1103 = vtanh.f32 %v752_v8 }
 0x4e8   :  { %951 = vmatpush.bf16.msra.mxu0 %v944_v36 }
 0x4eb   :  { %v1102_v20 = vpop.eup %1101 }
 0x4ec   :  { %v1104_v22 = vpop.eup %1103  ;;  %v757_v23 = vadd.f32 1.0, %v1102_v20 }
 0x4ed   :  { %v756_v55 = vadd.f32 1.0, %v1104_v22 }
 0x4ee   :  { %v759_v25 = vmul.f32 %v757_v23, %v743_v9  ;;  %v930_v23 = vld [vmem:[#allocation2 + $0x1d0] sm:$0xff] }
 0x4ef   :  { %v758_v26 = vmul.f32 %v756_v55, %v742_v24  ;;  %v931_v55 = vld [vmem:[#allocation2 + $0x1d8] sm:$0xff] }
 0x4f0   :  { %782 = vmatpush.msrb.mxu3 %v759_v25  ;;  %v928_v25 = vld [vmem:[#allocation2 + $0x1c0] sm:$0xff]  ;;  %v943_v24 = vpack.c.bf16 %v931_v55, %v930_v23 }
 0x4f2   :  { %783 = vmatpush.msrb.mxu3 %v758_v26  ;;  %v929_v26 = vld [vmem:[#allocation2 + $0x1c8] sm:$0xff]  ;;  %952 = vmatpush.bf16.msra.mxu0 %v943_v24 }
 0x4f3   :  { %1033 = vmatmul.msk.f32.vlgmr.msrb.gmra.mxu3 %vm40_vm0, %v760_v2  ;;  %v942_v2 = vpack.c.bf16 %v929_v26, %v928_v25 }
 0x4f6   :  { %953 = vmatpush.bf16.msra.mxu0 %v942_v2 }
 0x4fb   :  { %1034 = vmatmul.msk.f32.gmra.mxu3 %vm40_vm0, %v761_v28  ;;  %v926_v28 = vld [vmem:[#allocation2 + $0x1b0] sm:$0xff] }
 0x4fc   :  { %v941_v44 = vpack.c.bf16 %v927_v33, %v926_v28 }
 0x4fe   :  { %954 = vmatpush.bf16.msra.mxu0 %v941_v44 }
 0x502   :  { %955 = vmatpush.bf16.msra.mxu0 %v940_v34 }
 0x576   :  { %v785_v16 = vpop.f32.mrf.mxu3 }
 0x577   :  { %v795_v39 = vpack.c.bf16 %v785_v16, %v785_v16  ;;  %v923_v16 = vld [vmem:[#allocation2 + $0x198] sm:$0xff] }
 0x579   :  { %1036 = vmatmul.msk.bf16.vlgmr.msrb.gmra.mxu2 %vm324_vm8, %v795_v39  ;;  %v939_v39 = vpack.c.bf16 %v923_v16, %v922_v27 }
 0x57b   :  { %956 = vmatpush.bf16.msra.mxu0 %v939_v39 }
 0x57e   :  { %v788_v21 = vpop.f32.mrf.mxu3 }
 0x57f   :  { %v802_v40 = vpack.c.bf16 %v788_v21, %v788_v21  ;;  %v873_v21 = vld [vmem:[#allocation2 + $0x178] sm:$0x1f] }
 0x581   :  { %1035 = vmatmul.msk.bf16.vlgmr.msrb.gmra.mxu1 %vm324_vm8, %v802_v40  ;;  %v888_v40 = vperm.slane %v873_v21, 0 }
 0x5fc   :  { %v833_v41 = vpop.f32.mrf.mxu2 }
 0x5fe   :  { %v817_v46 = vpop.f32.mrf.mxu1 }
 0x5ff   :  { %v834_v35 = vadd.f32 %v833_v41, %v817_v46 }
 0x601   :  { %v839_v32 = vadd.f32 %v1082_v43, %v834_v35 }
 0x603   :  { %v840_v37 = vsel %vm684_vm15, %v839_v32, 0.0  ;;  %v847_v47 = vmul.f32 %v839_v32, %v839_v32 }
 0x604   :  { %v841_v49 = vrot.slane %v840_v37, 4  ;;  %v835_v50 = vpop.f32.mrf.mxu2 }
 0x605   :  { %v848_v52 = vsel %vm684_vm15, %v847_v47, 0.0 }
 0x606   :  { %v842_v56 = vadd.f32 %v841_v49, %v840_v37  ;;  %v849_v57 = vrot.slane %v848_v52, 4  ;;  %v819_v58 = vpop.f32.mrf.mxu1  ;;  %v880_v37 = vperm.slane %v873_v21, 2  ;;  %v897_v49 = vperm.slane %v873_v21, 1 }
 0x608   :  { %v843_v59 = vrot.slane %v842_v56, 2  ;;  %v850_v60 = vadd.f32 %v849_v57, %v848_v52  ;;  %v915_v52 = vperm.slane %v873_v21, 4 }
 0x60a   :  { %v844_v31 = vadd.f32 %v843_v59, %v842_v56  ;;  %v851_v38 = vrot.slane %v850_v60, 2 }
 0x60c   :  { %v852_v54 = vadd.f32 %v851_v38, %v850_v60  ;;  %v845_v61 = vrot.slane %v844_v31, 1  ;;  %v913_v38 = vpop.permute.xlu0 %912 }
 0x60e   :  { %v853_v62 = vrot.slane %v852_v54, 1  ;;  %v846_v63 = vadd.f32 %v845_v61, %v844_v31 }
 0x610   :  { %v854_v0 = vadd.f32 %v853_v62, %v852_v54  ;;  %v855_v3 = vmul.f32 0.125, %v846_v63  ;;  %v916_v63 = vmul.f32 %v915_v52, %v913_v38 }
 0x612   :  { %v856_v4 = vmul.f32 0.125, %v854_v0  ;;  %v857_v5 = vmul.f32 %v855_v3, %v855_v3  ;;  %v860_v20 = vsub.f32 %v839_v32, %v855_v3  ;;  %v906_v32 = vperm.slane %v873_v21, 3 }
 0x614   :  { %v858_v48 = vsub.f32 %v856_v4, %v857_v5 }
 0x616   :  { %v859_v45 = vmax.f32 %v858_v48, 0.0  ;;  %v1083_v48 = vld [vmem:[#allocation2 + $0x180] ss:$0 sm:$0xff] }
 0x618   :  { %v861_v1 = vadd.f32 1e-05, %v859_v45 }
 0x61a   :  { %1105 = vrsqrt.f32 %v861_v1  ;;  %vm868_vm4 = vweird.f32 %v861_v1 }
 0x620   :  { %v1106_v51 = vpop.eup %1105 }
 0x621   :  { %v863_v14 = vmul.f32 %v1106_v51, %v861_v1  ;;  %vm869_vm0 = vweird.f32 %v1106_v51 }
 0x622   :  { %vm870_vm5 = vmor %vm868_vm4, %vm869_vm0 }
 0x623   :  { %v864_v18 = vmul.f32 %v1106_v51, %v863_v14 }
 0x625   :  { %v865_v19 = vmul.f32 0.5, %v864_v18 }
 0x627   :  { %v866_v42 = vsub.f32 1.5, %v865_v19 }
 0x629   :  { %v867_v8 = vmul.f32 %v1106_v51, %v866_v42 }
 0x62b   :  { %v871_v22 = vsel %vm870_vm5, %v1106_v51, %v867_v8 }
 0x62c   :  { %v872_v9 = vmul.f32 %v871_v22, %v860_v20 }
 0x62e   :  { %876 = vrot.lane.b32.xlu1 %v872_v9, %s1172_s24 }
 0x636   :  { %894 = vperm.xlu1 %1074, %v1405_v12   ;;  %v886_v12 = vpop.permute.xlu2 %885 }
 0x637   :  { %v889_v46 = vmul.f32 %v888_v40, %v886_v12 }
 0x63e   :  { %v904_v47 = vpop.permute.xlu2 %903 }
 0x63f   :  { %v907_v56 = vmul.f32 %v906_v32, %v904_v47 }
 0x6a0   :  { %v877_v41 = vpop.permute.xlu1 %876 }
 0x6a1   :  { %v879_v43 = vsel %vm684_vm15, %v872_v9, %v877_v41 }
 0x6a2   :  { %v882_v35 = vrot.slane %v879_v43, 6  ;;  %v881_v58 = vmul.f32 %v880_v37, %v879_v43  ;;  %v901_v59 = vrot.slane %v879_v43, 1  ;;  %v892_v60 = vrot.slane %v879_v43, 7 }
 0x6a3   :  { %v910_v54 = vrot.slane %v879_v43, 2 }
 0x6a4   :  { %v890_v50 = vmul.f32 %v889_v46, %v882_v35  ;;  %v908_v0 = vmul.f32 %v907_v56, %v901_v59 }
 0x6a5   :  { %v917_v4 = vmul.f32 %v916_v63, %v910_v54 }
 0x6a6   :  { %v891_v61 = vadd.f32 %v890_v50, %v881_v58 }
 0x6a8   :  { %v895_v57 = vpop.permute.xlu1 %894 }
 0x6a9   :  { %v898_v31 = vmul.f32 %v897_v49, %v895_v57 }
 0x6ab   :  { %v899_v62 = vmul.f32 %v898_v31, %v892_v60 }
 0x6ad   :  { %v900_v3 = vadd.f32 %v899_v62, %v891_v61 }
 0x6af   :  { %v909_v5 = vadd.f32 %v908_v0, %v900_v3 }
 0x6b1   :  { %v918_v45 = vadd.f32 %v917_v4, %v909_v5 }
 0x6b3   :  { %v921_v53 = vadd.f32 %v1083_v48, %v918_v45 }
 0x6b5   :  { %v938_v6 = vpack.c.bf16 %v921_v53, %v921_v53 }
 0x6b7   :  { %957 = vmatmul.bf16.vlgmr.msra.gmra.mxu0 %v938_v6 }
 0x734   :  { %v958_v7 = vpop.f32.mrf.mxu0 }
 0x735   :  { %v959_v10 = vadd.f32 %v1084_v13, %v958_v7 }
 0x737   :  { %v962_v1 = vsel %vm684_vm15, %v959_v10, 0.0  ;;  %v969_v11 = vmul.f32 %v959_v10, %v959_v10 }
 0x738   :  { %v963_v15 = vrot.slane %v962_v1, 4 }
 0x739   :  { %v970_v17 = vsel %vm684_vm15, %v969_v11, 0.0 }
 0x73a   :  { %v964_v36 = vadd.f32 %v963_v15, %v962_v1  ;;  %v971_v51 = vrot.slane %v970_v17, 4 }
 0x73c   :  { %v965_v14 = vrot.slane %v964_v36, 2  ;;  %v972_v18 = vadd.f32 %v971_v51, %v970_v17  ;;  %v960_v19 = vpop.f32.mrf.mxu0 }
 0x73e   :  { %v966_v42 = vadd.f32 %v965_v14, %v964_v36  ;;  %v973_v8 = vrot.slane %v972_v18, 2 }
 0x740   :  { %v967_v20 = vrot.slane %v966_v42, 1  ;;  %v974_v22 = vadd.f32 %v973_v8, %v972_v18 }
 0x742   :  { %v968_v9 = vadd.f32 %v967_v20, %v966_v42  ;;  %v975_v23 = vrot.slane %v974_v22, 1 }
 0x744   :  { %v976_v55 = vadd.f32 %v975_v23, %v974_v22  ;;  %v977_v25 = vmul.f32 0.125, %v968_v9 }
 0x746   :  { %v978_v24 = vmul.f32 0.125, %v976_v55  ;;  %v979_v26 = vmul.f32 %v977_v25, %v977_v25  ;;  %v982_v39 = vsub.f32 %v959_v10, %v977_v25 }
 0x748   :  { %v980_v2 = vsub.f32 %v978_v24, %v979_v26 }
 0x74a   :  { %v981_v28 = vmax.f32 %v980_v2, 0.0 }
 0x74c   :  { %v983_v33 = vadd.f32 1e-05, %v981_v28 }
 0x74e   :  { %1107 = vrsqrt.f32 %v983_v33  ;;  %vm990_vm7 = vweird.f32 %v983_v33 }
 0x754   :  { %v1108_v44 = vpop.eup %1107 }
 0x755   :  { %v985_v29 = vmul.f32 %v1108_v44, %v983_v33  ;;  %vm991_vm6 = vweird.f32 %v1108_v44 }
 0x756   :  { %vm992_vm8 = vmor %vm990_vm7, %vm991_vm6 }
 0x757   :  { %v986_v30 = vmul.f32 %v1108_v44, %v985_v29 }
 0x759   :  { %v987_v27 = vmul.f32 0.5, %v986_v30 }
 0x75b   :  { %v988_v34 = vsub.f32 1.5, %v987_v27 }
 0x75d   :  { %v989_v16 = vmul.f32 %v1108_v44, %v988_v34 }
 0x75f   :  { %v993_v12 = vsel %vm992_vm8, %v1108_v44, %v989_v16 }
 0x760   :  { %v994_v21 = vmul.f32 %v993_v12, %v982_v39 }
 0x762   :  { %v996_v40 = vmul.f32 0.044715, %v994_v21  ;;  %v995_v37 = vmul.f32 0.5, %v994_v21 }
 0x764   :  { %v997_v41 = vmul.f32 %v996_v40, %v994_v21 }
 0x766   :  { %v998_v43 = vmul.f32 %v997_v41, %v994_v21 }
 0x768   :  { %v999_v46 = vadd.f32 %v998_v43, %v994_v21 }
 0x76a   :  { %v1000_v35 = vmul.f32 0.7978846, %v999_v46 }
 0x76c   :  { %1109 = vtanh.f32 %v1000_v35 }
 0x772   :  { %v1110_v32 = vpop.eup %1109 }
 0x773   :  { %v1002_v47 = vadd.f32 1.0, %v1110_v32 }
 0x775   :  { %v1003_v49 = vmul.f32 %v1002_v47, %v995_v37 }
 0x777   :  { %1004 = vst.msk [vmem:[#allocation5] sm:$0xff] %vm684_vm15, %v1003_v49 }
 0x778   :  { %1015 = dma.vmem_to_hbm [thread:$0]  %s1011_s26, 128, %s1013_s29, [#allocation4]  }
 0x779   :  { %1161 = dma.done.wait [#allocation4], 128  }
 0x77a   :  { %1162 = vsyncadd [#allocation4], 4294967168 }
 0x77b   :  { %1020 = vsyncpa [#allocation3], 1 }
 0x77c   :  { %1021 = vsyncpa [#allocation4], 1 }

</bundles_post_ra>
